<compile_context>
chip_gen: v5e
topology: v5e:2x2
jax: 0.10.0
libtpu: 0.0.40
codegen_flags: <defaults>
</compile_context>

<pallas_src>
import jax
import jax.numpy as jnp
from jax.experimental import pallas as pl
from jax.experimental.pallas import tpu as pltpu


def _residual_block_kernel(x_ref, w1_ref, w2_ref, b1_ref, b2_ref, mask_ref,
                           out_ref, mid_ref):
    """One batch image per grid step.

    x_ref    : (Cin, Lp)       haloed, zero-padded, flattened input frame
    w1_ref   : (Cout, 9*Cin)   conv1 weights (BN1 scale folded), tap-major cols
    w2_ref   : (Cout, 9*Cout)  conv2 weights (BN2 scale folded)
    b1/b2    : (Cout, 1)       folded BN biases
    mask_ref : (1, L)          1.0 on frame interior, 0.0 on frame border
    out_ref  : (Cout, L)       output over the padded frame (wrapper crops)
    mid_ref  : (Cout, Lp)      VMEM scratch: haloed conv1 activation
    """
    cin, lp = x_ref.shape
    cout, l = out_ref.shape
    p = (lp - l) // 2            # lane halo = Wp + 1
    wp = p - 1                   # padded frame width

    def conv3x3(src_ref, w_ref, kin):
        # 9 taps, fully unrolled: tap (ky, kx) is the contiguous lane slice at
        # flat offset (ky-1)*Wp + (kx-1); each tap is a lane-dense
        # (Cout, kin) x (kin, L) MXU matmul accumulated in f32.
        acc = jnp.zeros((cout, l), jnp.float32)
        for ky in range(3):
            for kx in range(3):
                t = ky * 3 + kx
                off = (ky - 1) * wp + (kx - 1)
                slab = src_ref[:, p + off:p + off + l]
                acc = acc + jnp.dot(w_ref[:, t * kin:(t + 1) * kin], slab,
                                    preferred_element_type=jnp.float32)
        return acc

    # ---- conv1 + folded-bn1 bias + relu; zero the frame border so conv2 ----
    # ---- sees proper zero padding on the staged activation.             ----
    y1 = jnp.maximum(conv3x3(x_ref, w1_ref, cin) + b1_ref[...], 0.0)
    y1 = y1 * mask_ref[...]

    # ---- stage y1 into the haloed scratch (only halo strips are zeroed) ----
    mid_ref[:, :p] = jnp.zeros((cout, p), jnp.float32)
    mid_ref[:, p + l:] = jnp.zeros((cout, p), jnp.float32)
    mid_ref[:, p:p + l] = y1

    # ---- conv2 + folded-bn2 bias + residual (interior of x) + relu ----
    res = x_ref[:, p:p + l]
    out = conv3x3(mid_ref, w2_ref, cout) + b2_ref[...] + res
    out_ref[...] = jnp.maximum(out, 0.0)


def residual_block_pallas(x_nchw, params, eps=1e-5):
    """Wrapper. x_nchw: (N, Cin, H, W) -> (N, Cout, H, W)."""
    w1, w2 = params["w1"], params["w2"]              # (Cout, Cin, 3, 3) OIHW
    g1, be1, m1, v1 = params["bn1"]
    g2, be2, m2, v2 = params["bn2"]

    N, Cin, H, W = x_nchw.shape
    Cout = w1.shape[0]
    assert Cin == Cout, "identity residual path requires in_channels == out_channels"

    Hp, Wp = H + 2, W + 2
    L = Hp * Wp          # flattened padded frame (lane axis)
    P = Wp + 1           # lane halo so every 3x3 tap is a contiguous slice
    Lp = L + 2 * P

    # Fold BN (eval mode): bn(z) = s*z + (beta - mean*s); s folds into weights.
    s1 = (g1 / jnp.sqrt(v1 + eps)).astype(jnp.float32)
    b1 = (be1 - m1 * s1).reshape(Cout, 1).astype(jnp.float32)
    s2 = (g2 / jnp.sqrt(v2 + eps)).astype(jnp.float32)
    b2 = (be2 - m2 * s2).reshape(Cout, 1).astype(jnp.float32)

    # OIHW -> (Cout, 9*Cin), column index t*Cin + ci with t = ky*3 + kx.
    w1_mat = jnp.transpose(w1.astype(jnp.float32) * s1[:, None, None, None],
                           (0, 2, 3, 1)).reshape(Cout, 9 * Cin)
    w2_mat = jnp.transpose(w2.astype(jnp.float32) * s2[:, None, None, None],
                           (0, 2, 3, 1)).reshape(Cout, 9 * Cout)

    # Channel-major, spatially zero-padded, flattened, +/-P lane halo.
    x_pad = jnp.pad(x_nchw.astype(jnp.float32), ((0, 0), (0, 0), (1, 1), (1, 1)))
    x_flat = jnp.pad(x_pad.reshape(N, Cin, L), ((0, 0), (0, 0), (P, P)))

    # Interior mask over the padded frame (zeros conv1's frame-border lanes).
    yy, xx = jnp.meshgrid(jnp.arange(Hp), jnp.arange(Wp), indexing="ij")
    mask = (((yy >= 1) & (yy <= H) & (xx >= 1) & (xx <= W))
            .astype(jnp.float32).reshape(1, L))

    flops = 2 * (2 * 9 * N * H * W * Cin * Cout)
    bytes_accessed = 4 * (x_flat.size + w1_mat.size + w2_mat.size
                          + b1.size + b2.size + mask.size + N * Cout * L)

    out_flat = pl.pallas_call(
        _residual_block_kernel,
        out_shape=jax.ShapeDtypeStruct((N, Cout, L), jnp.float32),
        grid=(N,),
        in_specs=[
            pl.BlockSpec((None, Cin, Lp), lambda n: (n, 0, 0)),    # x, per image
            pl.BlockSpec((Cout, 9 * Cin), lambda n: (0, 0)),       # w1, resident
            pl.BlockSpec((Cout, 9 * Cout), lambda n: (0, 0)),      # w2, resident
            pl.BlockSpec((Cout, 1), lambda n: (0, 0)),             # b1, resident
            pl.BlockSpec((Cout, 1), lambda n: (0, 0)),             # b2, resident
            pl.BlockSpec((1, L), lambda n: (0, 0)),                # mask, resident
        ],
        out_specs=pl.BlockSpec((None, Cout, L), lambda n: (n, 0, 0)),
        scratch_shapes=[pltpu.VMEM((Cout, Lp), jnp.float32)],
        compiler_params=pltpu.CompilerParams(
            dimension_semantics=("parallel",),
            vmem_limit_bytes=32 * 1024 * 1024),
        cost_estimate=pl.CostEstimate(flops=flops, transcendentals=0,
                                      bytes_accessed=bytes_accessed),
    )(x_flat, w1_mat, w2_mat, b1, b2, mask)

    # Crop the frame border; layout is already NCHW channel-major.
    return out_flat.reshape(N, Cout, Hp, Wp)[:, :, 1:H + 1, 1:W + 1]


def residual_block_ref(x_nchw, params, eps=1e-5):
    """Pure-JAX reference (for correctness check)."""
    w1, w2 = params["w1"], params["w2"]
    g1, be1, m1, v1 = params["bn1"]
    g2, be2, m2, v2 = params["bn2"]

    def conv(x, w):
        return jax.lax.conv_general_dilated(
            x, w, window_strides=(1, 1), padding=((1, 1), (1, 1)),
            dimension_numbers=("NCHW", "OIHW", "NCHW"))

    def bn(y, g, b, m, v):
        g, b, m, v = (t[None, :, None, None] for t in (g, b, m, v))
        return g * (y - m) / jnp.sqrt(v + eps) + b

    out = jnp.maximum(bn(conv(x_nchw, w1), g1, be1, m1, v1), 0.0)
    out = bn(conv(out, w2), g2, be2, m2, v2)
    return jnp.maximum(out + x_nchw, 0.0)


if __name__ == "__main__":
    N, C, H, W = 2, 4, 16, 16   # in_channels == out_channels, stride=1, no downsample

    key = jax.random.PRNGKey(0)
    keys = jax.random.split(key, 10)
    x = jax.random.normal(keys[0], (N, C, H, W), jnp.float32)

    params = {
        "w1": jax.random.normal(keys[1], (C, C, 3, 3), jnp.float32) * 0.1,
        "w2": jax.random.normal(keys[2], (C, C, 3, 3), jnp.float32) * 0.1,
        "bn1": (
            jax.random.uniform(keys[3], (C,), jnp.float32, 0.5, 1.5),   # gamma
            jax.random.normal(keys[4], (C,), jnp.float32) * 0.1,        # beta
            jax.random.normal(keys[5], (C,), jnp.float32) * 0.1,        # running_mean
            jax.random.uniform(keys[6], (C,), jnp.float32, 0.5, 1.5),   # running_var
        ),
        "bn2": (
            jax.random.uniform(keys[7], (C,), jnp.float32, 0.5, 1.5),
            jax.random.normal(keys[8], (C,), jnp.float32) * 0.1,
            jax.random.normal(keys[9], (C,), jnp.float32) * 0.1,
            jax.random.uniform(keys[0], (C,), jnp.float32, 0.5, 1.5),
        ),
    }

    out = residual_block_pallas(x, params)
    out = jax.block_until_ready(out)

    ref = residual_block_ref(x, params)
    assert out.shape == (N, C, H, W)
    assert jnp.allclose(out, ref, atol=1e-4, rtol=1e-4), "mismatch vs reference"

    print("KERNEL_OK")
</pallas_src>

<mosaic_0001>
module attributes {stable_mosaic.version = 11 : i64} {
  func.func @_residual_block_kernel(%arg0: i32, %arg1: memref<1x4x362xf32, #tpu.memory_space<vmem>>, %arg2: memref<4x36xf32, #tpu.memory_space<vmem>>, %arg3: memref<4x36xf32, #tpu.memory_space<vmem>>, %arg4: memref<4x1xf32, #tpu.memory_space<vmem>>, %arg5: memref<4x1xf32, #tpu.memory_space<vmem>>, %arg6: memref<1x324xf32, #tpu.memory_space<vmem>>, %arg7: memref<1x4x324xf32, #tpu.memory_space<vmem>>, %arg8: memref<4x362xf32, #tpu.memory_space<vmem>>) attributes {dimension_semantics = [#tpu.dimension_semantics<parallel>], iteration_bounds = array<i64: 2>, scalar_prefetch = 0 : i64, scratch_operands = 1 : i64, tpu.core_type = #tpu.core_type<tc>, window_params = [{transform_indices = @transform_0, window_bounds = array<i64: 1, 4, 362>}, {pipeline_mode = #tpu.pipeline_mode<synchronous>, transform_indices = @transform_1, window_bounds = array<i64: 4, 36>}, {pipeline_mode = #tpu.pipeline_mode<synchronous>, transform_indices = @transform_2, window_bounds = array<i64: 4, 36>}, {pipeline_mode = #tpu.pipeline_mode<synchronous>, transform_indices = @transform_3, window_bounds = array<i64: 4, 1>}, {pipeline_mode = #tpu.pipeline_mode<synchronous>, transform_indices = @transform_4, window_bounds = array<i64: 4, 1>}, {pipeline_mode = #tpu.pipeline_mode<synchronous>, transform_indices = @transform_5, window_bounds = array<i64: 1, 324>}, {transform_indices = @transform_6, window_bounds = array<i64: 1, 4, 324>}]} {
    %cst = arith.constant 0.000000e+00 : f32
    %0 = vector.broadcast %cst : f32 to vector<4x324xf32>
    %c0 = arith.constant 0 : index
    %c0_0 = arith.constant 0 : index
    %c0_1 = arith.constant 0 : index
    %1 = vector.load %arg1[%c0, %c0_0, %c0_1] : memref<1x4x362xf32, #tpu.memory_space<vmem>>, vector<1x4x324xf32>
    %2 = vector.shape_cast %1 : vector<1x4x324xf32> to vector<4x324xf32>
    %c0_2 = arith.constant 0 : index
    %c0_3 = arith.constant 0 : index
    %3 = vector.load %arg2[%c0_2, %c0_3] : memref<4x36xf32, #tpu.memory_space<vmem>>, vector<4x4xf32>
    %cst_4 = arith.constant dense<0.000000e+00> : vector<4x324xf32>
    %4 = tpu.matmul %3, %2, %cst_4 {dimension_numbers = #tpu.dot_dimension_numbers<[1], [0], [0], [1], [0, 0, 1, 1], [], []>} : vector<4x4xf32>, vector<4x324xf32>, vector<4x324xf32> -> vector<4x324xf32>
    %5 = arith.addf %0, %4 : vector<4x324xf32>
    %c0_5 = arith.constant 0 : index
    %c0_6 = arith.constant 0 : index
    %c1 = arith.constant 1 : index
    %6 = vector.load %arg1[%c0_5, %c0_6, %c1] : memref<1x4x362xf32, #tpu.memory_space<vmem>>, vector<1x4x324xf32>
    %7 = vector.shape_cast %6 : vector<1x4x324xf32> to vector<4x324xf32>
    %c0_7 = arith.constant 0 : index
    %c4 = arith.constant 4 : index
    %8 = vector.load %arg2[%c0_7, %c4] : memref<4x36xf32, #tpu.memory_space<vmem>>, vector<4x4xf32>
    %cst_8 = arith.constant dense<0.000000e+00> : vector<4x324xf32>
    %9 = tpu.matmul %8, %7, %cst_8 {dimension_numbers = #tpu.dot_dimension_numbers<[1], [0], [0], [1], [0, 0, 1, 1], [], []>} : vector<4x4xf32>, vector<4x324xf32>, vector<4x324xf32> -> vector<4x324xf32>
    %10 = arith.addf %5, %9 : vector<4x324xf32>
    %c0_9 = arith.constant 0 : index
    %c0_10 = arith.constant 0 : index
    %c2 = arith.constant 2 : index
    %11 = vector.load %arg1[%c0_9, %c0_10, %c2] : memref<1x4x362xf32, #tpu.memory_space<vmem>>, vector<1x4x324xf32>
    %12 = vector.shape_cast %11 : vector<1x4x324xf32> to vector<4x324xf32>
    %c0_11 = arith.constant 0 : index
    %c8 = arith.constant 8 : index
    %13 = vector.load %arg2[%c0_11, %c8] : memref<4x36xf32, #tpu.memory_space<vmem>>, vector<4x4xf32>
    %cst_12 = arith.constant dense<0.000000e+00> : vector<4x324xf32>
    %14 = tpu.matmul %13, %12, %cst_12 {dimension_numbers = #tpu.dot_dimension_numbers<[1], [0], [0], [1], [0, 0, 1, 1], [], []>} : vector<4x4xf32>, vector<4x324xf32>, vector<4x324xf32> -> vector<4x324xf32>
    %15 = arith.addf %10, %14 : vector<4x324xf32>
    %c0_13 = arith.constant 0 : index
    %c0_14 = arith.constant 0 : index
    %c18 = arith.constant 18 : index
    %16 = vector.load %arg1[%c0_13, %c0_14, %c18] : memref<1x4x362xf32, #tpu.memory_space<vmem>>, vector<1x4x324xf32>
    %17 = vector.shape_cast %16 : vector<1x4x324xf32> to vector<4x324xf32>
    %c0_15 = arith.constant 0 : index
    %c12 = arith.constant 12 : index
    %18 = vector.load %arg2[%c0_15, %c12] : memref<4x36xf32, #tpu.memory_space<vmem>>, vector<4x4xf32>
    %cst_16 = arith.constant dense<0.000000e+00> : vector<4x324xf32>
    %19 = tpu.matmul %18, %17, %cst_16 {dimension_numbers = #tpu.dot_dimension_numbers<[1], [0], [0], [1], [0, 0, 1, 1], [], []>} : vector<4x4xf32>, vector<4x324xf32>, vector<4x324xf32> -> vector<4x324xf32>
    %20 = arith.addf %15, %19 : vector<4x324xf32>
    %c0_17 = arith.constant 0 : index
    %c0_18 = arith.constant 0 : index
    %c19 = arith.constant 19 : index
    %21 = vector.load %arg1[%c0_17, %c0_18, %c19] : memref<1x4x362xf32, #tpu.memory_space<vmem>>, vector<1x4x324xf32>
    %22 = vector.shape_cast %21 : vector<1x4x324xf32> to vector<4x324xf32>
    %c0_19 = arith.constant 0 : index
    %c16 = arith.constant 16 : index
    %23 = vector.load %arg2[%c0_19, %c16] : memref<4x36xf32, #tpu.memory_space<vmem>>, vector<4x4xf32>
    %cst_20 = arith.constant dense<0.000000e+00> : vector<4x324xf32>
    %24 = tpu.matmul %23, %22, %cst_20 {dimension_numbers = #tpu.dot_dimension_numbers<[1], [0], [0], [1], [0, 0, 1, 1], [], []>} : vector<4x4xf32>, vector<4x324xf32>, vector<4x324xf32> -> vector<4x324xf32>
    %25 = arith.addf %20, %24 : vector<4x324xf32>
    %c0_21 = arith.constant 0 : index
    %c0_22 = arith.constant 0 : index
    %c20 = arith.constant 20 : index
    %26 = vector.load %arg1[%c0_21, %c0_22, %c20] : memref<1x4x362xf32, #tpu.memory_space<vmem>>, vector<1x4x324xf32>
    %27 = vector.shape_cast %26 : vector<1x4x324xf32> to vector<4x324xf32>
    %c0_23 = arith.constant 0 : index
    %c20_24 = arith.constant 20 : index
    %28 = vector.load %arg2[%c0_23, %c20_24] : memref<4x36xf32, #tpu.memory_space<vmem>>, vector<4x4xf32>
    %cst_25 = arith.constant dense<0.000000e+00> : vector<4x324xf32>
    %29 = tpu.matmul %28, %27, %cst_25 {dimension_numbers = #tpu.dot_dimension_numbers<[1], [0], [0], [1], [0, 0, 1, 1], [], []>} : vector<4x4xf32>, vector<4x324xf32>, vector<4x324xf32> -> vector<4x324xf32>
    %30 = arith.addf %25, %29 : vector<4x324xf32>
    %c0_26 = arith.constant 0 : index
    %c0_27 = arith.constant 0 : index
    %c36 = arith.constant 36 : index
    %31 = vector.load %arg1[%c0_26, %c0_27, %c36] : memref<1x4x362xf32, #tpu.memory_space<vmem>>, vector<1x4x324xf32>
    %32 = vector.shape_cast %31 : vector<1x4x324xf32> to vector<4x324xf32>
    %c0_28 = arith.constant 0 : index
    %c24 = arith.constant 24 : index
    %33 = vector.load %arg2[%c0_28, %c24] : memref<4x36xf32, #tpu.memory_space<vmem>>, vector<4x4xf32>
    %cst_29 = arith.constant dense<0.000000e+00> : vector<4x324xf32>
    %34 = tpu.matmul %33, %32, %cst_29 {dimension_numbers = #tpu.dot_dimension_numbers<[1], [0], [0], [1], [0, 0, 1, 1], [], []>} : vector<4x4xf32>, vector<4x324xf32>, vector<4x324xf32> -> vector<4x324xf32>
    %35 = arith.addf %30, %34 : vector<4x324xf32>
    %c0_30 = arith.constant 0 : index
    %c0_31 = arith.constant 0 : index
    %c37 = arith.constant 37 : index
    %36 = vector.load %arg1[%c0_30, %c0_31, %c37] : memref<1x4x362xf32, #tpu.memory_space<vmem>>, vector<1x4x324xf32>
    %37 = vector.shape_cast %36 : vector<1x4x324xf32> to vector<4x324xf32>
    %c0_32 = arith.constant 0 : index
    %c28 = arith.constant 28 : index
    %38 = vector.load %arg2[%c0_32, %c28] : memref<4x36xf32, #tpu.memory_space<vmem>>, vector<4x4xf32>
    %cst_33 = arith.constant dense<0.000000e+00> : vector<4x324xf32>
    %39 = tpu.matmul %38, %37, %cst_33 {dimension_numbers = #tpu.dot_dimension_numbers<[1], [0], [0], [1], [0, 0, 1, 1], [], []>} : vector<4x4xf32>, vector<4x324xf32>, vector<4x324xf32> -> vector<4x324xf32>
    %40 = arith.addf %35, %39 : vector<4x324xf32>
    %c0_34 = arith.constant 0 : index
    %c0_35 = arith.constant 0 : index
    %c38 = arith.constant 38 : index
    %41 = vector.load %arg1[%c0_34, %c0_35, %c38] : memref<1x4x362xf32, #tpu.memory_space<vmem>>, vector<1x4x324xf32>
    %42 = vector.shape_cast %41 : vector<1x4x324xf32> to vector<4x324xf32>
    %c0_36 = arith.constant 0 : index
    %c32 = arith.constant 32 : index
    %43 = vector.load %arg2[%c0_36, %c32] : memref<4x36xf32, #tpu.memory_space<vmem>>, vector<4x4xf32>
    %cst_37 = arith.constant dense<0.000000e+00> : vector<4x324xf32>
    %44 = tpu.matmul %43, %42, %cst_37 {dimension_numbers = #tpu.dot_dimension_numbers<[1], [0], [0], [1], [0, 0, 1, 1], [], []>} : vector<4x4xf32>, vector<4x324xf32>, vector<4x324xf32> -> vector<4x324xf32>
    %45 = arith.addf %40, %44 : vector<4x324xf32>
    %c0_38 = arith.constant 0 : index
    %c0_39 = arith.constant 0 : index
    %46 = vector.load %arg4[%c0_38, %c0_39] : memref<4x1xf32, #tpu.memory_space<vmem>>, vector<4x1xf32>
    %47 = vector.broadcast %46 : vector<4x1xf32> to vector<4x324xf32>
    %48 = arith.addf %45, %47 : vector<4x324xf32>
    %cst_40 = arith.constant 0.000000e+00 : f32
    %49 = vector.broadcast %cst_40 : f32 to vector<4x324xf32>
    %50 = arith.maximumf %48, %49 : vector<4x324xf32>
    %c0_41 = arith.constant 0 : index
    %c0_42 = arith.constant 0 : index
    %51 = vector.load %arg6[%c0_41, %c0_42] : memref<1x324xf32, #tpu.memory_space<vmem>>, vector<1x324xf32>
    %52 = vector.broadcast %51 : vector<1x324xf32> to vector<4x324xf32>
    %53 = arith.mulf %50, %52 : vector<4x324xf32>
    %cst_43 = arith.constant 0.000000e+00 : f32
    %54 = vector.broadcast %cst_43 : f32 to vector<4x19xf32>
    %c0_44 = arith.constant 0 : index
    %c0_45 = arith.constant 0 : index
    %55 = vector.load %arg8[%c0_44, %c0_45] : memref<4x362xf32, #tpu.memory_space<vmem>>, vector<4x19xf32>
    tpu.vector_store %arg8[%c0_44, %c0_45], %54 {strides = array<i32>} : memref<4x362xf32, #tpu.memory_space<vmem>>, vector<4x19xf32>,
    %cst_46 = arith.constant 0.000000e+00 : f32
    %56 = vector.broadcast %cst_46 : f32 to vector<4x19xf32>
    %c0_47 = arith.constant 0 : index
    %c343 = arith.constant 343 : index
    %57 = vector.load %arg8[%c0_47, %c343] : memref<4x362xf32, #tpu.memory_space<vmem>>, vector<4x19xf32>
    tpu.vector_store %arg8[%c0_47, %c343], %56 {strides = array<i32>} : memref<4x362xf32, #tpu.memory_space<vmem>>, vector<4x19xf32>,
    %c0_48 = arith.constant 0 : index
    %c19_49 = arith.constant 19 : index
    %58 = vector.load %arg8[%c0_48, %c19_49] : memref<4x362xf32, #tpu.memory_space<vmem>>, vector<4x324xf32>
    tpu.vector_store %arg8[%c0_48, %c19_49], %53 {strides = array<i32>} : memref<4x362xf32, #tpu.memory_space<vmem>>, vector<4x324xf32>,
    %c0_50 = arith.constant 0 : index
    %c0_51 = arith.constant 0 : index
    %c19_52 = arith.constant 19 : index
    %59 = vector.load %arg1[%c0_50, %c0_51, %c19_52] : memref<1x4x362xf32, #tpu.memory_space<vmem>>, vector<1x4x324xf32>
    %60 = vector.shape_cast %59 : vector<1x4x324xf32> to vector<4x324xf32>
    %cst_53 = arith.constant 0.000000e+00 : f32
    %61 = vector.broadcast %cst_53 : f32 to vector<4x324xf32>
    %c0_54 = arith.constant 0 : index
    %c0_55 = arith.constant 0 : index
    %62 = vector.load %arg8[%c0_54, %c0_55] : memref<4x362xf32, #tpu.memory_space<vmem>>, vector<4x324xf32>
    %c0_56 = arith.constant 0 : index
    %c0_57 = arith.constant 0 : index
    %63 = vector.load %arg3[%c0_56, %c0_57] : memref<4x36xf32, #tpu.memory_space<vmem>>, vector<4x4xf32>
    %cst_58 = arith.constant dense<0.000000e+00> : vector<4x324xf32>
    %64 = tpu.matmul %63, %62, %cst_58 {dimension_numbers = #tpu.dot_dimension_numbers<[1], [0], [0], [1], [0, 0, 1, 1], [], []>} : vector<4x4xf32>, vector<4x324xf32>, vector<4x324xf32> -> vector<4x324xf32>
    %65 = arith.addf %61, %64 : vector<4x324xf32>
    %c0_59 = arith.constant 0 : index
    %c1_60 = arith.constant 1 : index
    %66 = vector.load %arg8[%c0_59, %c1_60] : memref<4x362xf32, #tpu.memory_space<vmem>>, vector<4x324xf32>
    %c0_61 = arith.constant 0 : index
    %c4_62 = arith.constant 4 : index
    %67 = vector.load %arg3[%c0_61, %c4_62] : memref<4x36xf32, #tpu.memory_space<vmem>>, vector<4x4xf32>
    %cst_63 = arith.constant dense<0.000000e+00> : vector<4x324xf32>
    %68 = tpu.matmul %67, %66, %cst_63 {dimension_numbers = #tpu.dot_dimension_numbers<[1], [0], [0], [1], [0, 0, 1, 1], [], []>} : vector<4x4xf32>, vector<4x324xf32>, vector<4x324xf32> -> vector<4x324xf32>
    %69 = arith.addf %65, %68 : vector<4x324xf32>
    %c0_64 = arith.constant 0 : index
    %c2_65 = arith.constant 2 : index
    %70 = vector.load %arg8[%c0_64, %c2_65] : memref<4x362xf32, #tpu.memory_space<vmem>>, vector<4x324xf32>
    %c0_66 = arith.constant 0 : index
    %c8_67 = arith.constant 8 : index
    %71 = vector.load %arg3[%c0_66, %c8_67] : memref<4x36xf32, #tpu.memory_space<vmem>>, vector<4x4xf32>
    %cst_68 = arith.constant dense<0.000000e+00> : vector<4x324xf32>
    %72 = tpu.matmul %71, %70, %cst_68 {dimension_numbers = #tpu.dot_dimension_numbers<[1], [0], [0], [1], [0, 0, 1, 1], [], []>} : vector<4x4xf32>, vector<4x324xf32>, vector<4x324xf32> -> vector<4x324xf32>
    %73 = arith.addf %69, %72 : vector<4x324xf32>
    %c0_69 = arith.constant 0 : index
    %c18_70 = arith.constant 18 : index
    %74 = vector.load %arg8[%c0_69, %c18_70] : memref<4x362xf32, #tpu.memory_space<vmem>>, vector<4x324xf32>
    %c0_71 = arith.constant 0 : index
    %c12_72 = arith.constant 12 : index
    %75 = vector.load %arg3[%c0_71, %c12_72] : memref<4x36xf32, #tpu.memory_space<vmem>>, vector<4x4xf32>
    %cst_73 = arith.constant dense<0.000000e+00> : vector<4x324xf32>
    %76 = tpu.matmul %75, %74, %cst_73 {dimension_numbers = #tpu.dot_dimension_numbers<[1], [0], [0], [1], [0, 0, 1, 1], [], []>} : vector<4x4xf32>, vector<4x324xf32>, vector<4x324xf32> -> vector<4x324xf32>
    %77 = arith.addf %73, %76 : vector<4x324xf32>
    %c0_74 = arith.constant 0 : index
    %c19_75 = arith.constant 19 : index
    %78 = vector.load %arg8[%c0_74, %c19_75] : memref<4x362xf32, #tpu.memory_space<vmem>>, vector<4x324xf32>
    %c0_76 = arith.constant 0 : index
    %c16_77 = arith.constant 16 : index
    %79 = vector.load %arg3[%c0_76, %c16_77] : memref<4x36xf32, #tpu.memory_space<vmem>>, vector<4x4xf32>
    %cst_78 = arith.constant dense<0.000000e+00> : vector<4x324xf32>
    %80 = tpu.matmul %79, %78, %cst_78 {dimension_numbers = #tpu.dot_dimension_numbers<[1], [0], [0], [1], [0, 0, 1, 1], [], []>} : vector<4x4xf32>, vector<4x324xf32>, vector<4x324xf32> -> vector<4x324xf32>
    %81 = arith.addf %77, %80 : vector<4x324xf32>
    %c0_79 = arith.constant 0 : index
    %c20_80 = arith.constant 20 : index
    %82 = vector.load %arg8[%c0_79, %c20_80] : memref<4x362xf32, #tpu.memory_space<vmem>>, vector<4x324xf32>
    %c0_81 = arith.constant 0 : index
    %c20_82 = arith.constant 20 : index
    %83 = vector.load %arg3[%c0_81, %c20_82] : memref<4x36xf32, #tpu.memory_space<vmem>>, vector<4x4xf32>
    %cst_83 = arith.constant dense<0.000000e+00> : vector<4x324xf32>
    %84 = tpu.matmul %83, %82, %cst_83 {dimension_numbers = #tpu.dot_dimension_numbers<[1], [0], [0], [1], [0, 0, 1, 1], [], []>} : vector<4x4xf32>, vector<4x324xf32>, vector<4x324xf32> -> vector<4x324xf32>
    %85 = arith.addf %81, %84 : vector<4x324xf32>
    %c0_84 = arith.constant 0 : index
    %c36_85 = arith.constant 36 : index
    %86 = vector.load %arg8[%c0_84, %c36_85] : memref<4x362xf32, #tpu.memory_space<vmem>>, vector<4x324xf32>
    %c0_86 = arith.constant 0 : index
    %c24_87 = arith.constant 24 : index
    %87 = vector.load %arg3[%c0_86, %c24_87] : memref<4x36xf32, #tpu.memory_space<vmem>>, vector<4x4xf32>
    %cst_88 = arith.constant dense<0.000000e+00> : vector<4x324xf32>
    %88 = tpu.matmul %87, %86, %cst_88 {dimension_numbers = #tpu.dot_dimension_numbers<[1], [0], [0], [1], [0, 0, 1, 1], [], []>} : vector<4x4xf32>, vector<4x324xf32>, vector<4x324xf32> -> vector<4x324xf32>
    %89 = arith.addf %85, %88 : vector<4x324xf32>
    %c0_89 = arith.constant 0 : index
    %c37_90 = arith.constant 37 : index
    %90 = vector.load %arg8[%c0_89, %c37_90] : memref<4x362xf32, #tpu.memory_space<vmem>>, vector<4x324xf32>
    %c0_91 = arith.constant 0 : index
    %c28_92 = arith.constant 28 : index
    %91 = vector.load %arg3[%c0_91, %c28_92] : memref<4x36xf32, #tpu.memory_space<vmem>>, vector<4x4xf32>
    %cst_93 = arith.constant dense<0.000000e+00> : vector<4x324xf32>
    %92 = tpu.matmul %91, %90, %cst_93 {dimension_numbers = #tpu.dot_dimension_numbers<[1], [0], [0], [1], [0, 0, 1, 1], [], []>} : vector<4x4xf32>, vector<4x324xf32>, vector<4x324xf32> -> vector<4x324xf32>
    %93 = arith.addf %89, %92 : vector<4x324xf32>
    %c0_94 = arith.constant 0 : index
    %c38_95 = arith.constant 38 : index
    %94 = vector.load %arg8[%c0_94, %c38_95] : memref<4x362xf32, #tpu.memory_space<vmem>>, vector<4x324xf32>
    %c0_96 = arith.constant 0 : index
    %c32_97 = arith.constant 32 : index
    %95 = vector.load %arg3[%c0_96, %c32_97] : memref<4x36xf32, #tpu.memory_space<vmem>>, vector<4x4xf32>
    %cst_98 = arith.constant dense<0.000000e+00> : vector<4x324xf32>
    %96 = tpu.matmul %95, %94, %cst_98 {dimension_numbers = #tpu.dot_dimension_numbers<[1], [0], [0], [1], [0, 0, 1, 1], [], []>} : vector<4x4xf32>, vector<4x324xf32>, vector<4x324xf32> -> vector<4x324xf32>
    %97 = arith.addf %93, %96 : vector<4x324xf32>
    %c0_99 = arith.constant 0 : index
    %c0_100 = arith.constant 0 : index
    %98 = vector.load %arg5[%c0_99, %c0_100] : memref<4x1xf32, #tpu.memory_space<vmem>>, vector<4x1xf32>
    %99 = vector.broadcast %98 : vector<4x1xf32> to vector<4x324xf32>
    %100 = arith.addf %97, %99 : vector<4x324xf32>
    %101 = arith.addf %100, %60 : vector<4x324xf32>
    %cst_101 = arith.constant 0.000000e+00 : f32
    %102 = vector.broadcast %cst_101 : f32 to vector<4x324xf32>
    %103 = arith.maximumf %101, %102 : vector<4x324xf32>
    %c0_102 = arith.constant 0 : index
    %c0_103 = arith.constant 0 : index
    %c0_104 = arith.constant 0 : index
    %104 = vector.load %arg7[%c0_102, %c0_103, %c0_104] : memref<1x4x324xf32, #tpu.memory_space<vmem>>, vector<1x4x324xf32>
    %105 = vector.shape_cast %104 : vector<1x4x324xf32> to vector<4x324xf32>
    %106 = vector.shape_cast %103 : vector<4x324xf32> to vector<1x4x324xf32>
    tpu.vector_store %arg7[%c0_102, %c0_103, %c0_104], %106 {strides = array<i32>} : memref<1x4x324xf32, #tpu.memory_space<vmem>>, vector<1x4x324xf32>,
    return
  }
  func.func @transform_0(%arg0: i32) -> (i32, i32, i32) {
    %c0_i32 = arith.constant 0 : i32
    %c0_i32_0 = arith.constant 0 : i32
    %c0_i32_1 = arith.constant 0 : i32
    return %arg0, %c0_i32, %c0_i32_0 : i32, i32, i32
  }
  func.func @transform_1(%arg0: i32) -> (i32, i32) {
    %c0_i32 = arith.constant 0 : i32
    %c0_i32_0 = arith.constant 0 : i32
    %c0_i32_1 = arith.constant 0 : i32
    return %c0_i32, %c0_i32_0 : i32, i32
  }
  func.func @transform_2(%arg0: i32) -> (i32, i32) {
    %c0_i32 = arith.constant 0 : i32
    %c0_i32_0 = arith.constant 0 : i32
    %c0_i32_1 = arith.constant 0 : i32
    return %c0_i32, %c0_i32_0 : i32, i32
  }
  func.func @transform_3(%arg0: i32) -> (i32, i32) {
    %c0_i32 = arith.constant 0 : i32
    %c0_i32_0 = arith.constant 0 : i32
    %c0_i32_1 = arith.constant 0 : i32
    return %c0_i32, %c0_i32_0 : i32, i32
  }
  func.func @transform_4(%arg0: i32) -> (i32, i32) {
    %c0_i32 = arith.constant 0 : i32
    %c0_i32_0 = arith.constant 0 : i32
    %c0_i32_1 = arith.constant 0 : i32
    return %c0_i32, %c0_i32_0 : i32, i32
  }
  func.func @transform_5(%arg0: i32) -> (i32, i32) {
    %c0_i32 = arith.constant 0 : i32
    %c0_i32_0 = arith.constant 0 : i32
    %c0_i32_1 = arith.constant 0 : i32
    return %c0_i32, %c0_i32_0 : i32, i32
  }
  func.func @transform_6(%arg0: i32) -> (i32, i32, i32) {
    %c0_i32 = arith.constant 0 : i32
    %c0_i32_0 = arith.constant 0 : i32
    %c0_i32_1 = arith.constant 0 : i32
    return %arg0, %c0_i32, %c0_i32_0 : i32, i32, i32
  }
}

</mosaic_0001>

<bundles_post_ra>
// kernel: tpu_custom_call.1
= control target key start
LH: loop header
LB: loop body
LE: loop exit
PB: predicated region body
PF: predicated region fallthrough
CT: control target
= control target key end

     0   :  { %11 = vsyncpa [#allocation4], 0  ;;  %s2888_s0 = inlined_call_operand.hbm [shape: f32[2,4,362], index: 0, kind: input, shape index: {}]   ;;  %s2889_s1 = inlined_call_operand.vmem [shape: f32[4,36], index: 1, kind: input, shape index: {}]   ;;  %s2890_s2 = inlined_call_operand.vmem [shape: f32[4,36], index: 2, kind: input, shape index: {}]   ;;  %s2891_s3 = inlined_call_operand.vmem [shape: f32[4,1], index: 3, kind: input, shape index: {}]   ;;  %s2892_s4 = inlined_call_operand.vmem [shape: f32[4,1], index: 4, kind: input, shape index: {}]   ;;  %s2893_s5 = inlined_call_operand.vmem [shape: f32[1,324], index: 5, kind: input, shape index: {}]   ;;  %s2894_s6 = inlined_call_operand.hbm [shape: f32[2,4,324], index: 6, kind: output, shape index: {}]  }
   0x1   :  { %13 = vsyncpa [#allocation4 + $0x1], 0 }
   0x2   :  { %14 = vsyncpa [#allocation5], 0 }
   0x3   :  { %16 = vsyncpa [#allocation5 + $0x1], 0  ;;  %s2427_s21 = smov 0   ;;  %s2429_s22 = smov 0  }
   0x4   :  { %s2431_s23 = smov 0   ;;  %s2433_s24 = smov 0  }
   0x5 LB: > { %s2448_s25 = sadd.s32 4294967295, %s2372_s24   ;;  %s2089_s26 = sadd.s32 4294967294, %s2372_s24   ;;  %s2372_s24 = sphi %s2433_s24, %s2931_s24   ;;  %s2368_s23 = sphi %s2431_s23, %s2930_s23   ;;  %s2364_s22 = sphi %s2429_s22, %s2929_s22   ;;  %s2360_s21 = sphi %s2427_s21, %s2928_s21  }
   0x6   : > { %s2452_s27 = sadd.s32 1, %s2372_s24   ;;  %s29_s28 = sadd.s32 1, %s2368_s23 }
   0x7   : > { %s26_s29 = ssub.s32 %s2372_s24, %s2452_s27  ;;  %p36_p0 = scmp.ne.s32.totalorder %s2368_s23, %s2364_s22 }
   0x8   : > { %p27_p1 = scmp.eq.s32.totalorder %s26_s29, 0  ;;  %p37_p2 = scmp.eq.s32.totalorder %s2372_s24, 0 }
   0x9   : > { %p42_p3 = scmp.ne.s32.totalorder %s2364_s22, %s2360_s21  ;;  %p43_p4 = scmp.eq.s32.totalorder %s2448_s25, 0 }
   0xa   : > { %s2464_s30 = scalar_select %p27_p1, %s2368_s23, %s29_s28  }
   0xb   : > { %p38_p5 = por %p37_p2, %p36_p0  ;;  %p2466_p6 = por %p43_p4, %p42_p3 }
   0xc   : > { %2912 = sst [smem:[#allocation9_spill]] %s2464_s30  ;;  %p171_p7 = scmp.eq.s32.totalorder %s2448_s25, 1 }
   0xd   : > { %p177_p8 = scmp.eq.s32.totalorder %s2089_s26, 1  ;;  %p2091_p9 = scmp.ge.s32.totalorder %s2372_s24, 2 }
   0xe   : > { %p2221_p10 = scmp.lt.s32.totalorder %s2372_s24, 2  ;;  %p2473_p11 = por %p171_p7, %p36_p0 }
   0xf   : > { %p2477_p12 = por %p177_p8, %p42_p3  ;;  %s212_s10 = sand.u32 1, %s2368_s23  }
  0x10   : > { %s2206_s11 = smul.u32 12, %s2372_s24  ;;  %p2486_p13 = pnand %p2221_p10, %p38_p5 }
  0x11   : > { %s2205_s12 = smul.u32 12, %s212_s10  ;;  %s213_s20 = scalar_lea.sflag [#allocation4], %s212_s10 }
  0x12   : > { %s221_s15 = scalar_lea.hbm %s2888_s0, %s2206_s11  ;;  %p2280_p1 = pneg %p2486_p13 }
  0x13   : > { %s223_s17 = sshll.u32 %s221_s15, 4  ;;  %s216_s18 = scalar_lea.vmem [#allocation3], %s2205_s12  ;;  %s224_s17 = int_to_ptr.hbm [resolvable:$true] %s223_s17 }
  0x14   : > { %s225_s19 = sshll.u32 %s216_s18, 4  ;;  %s2276_s26 = sshra.s32 %s224_s17, 4  ;;  %s226_s19 = int_to_ptr.vmem [resolvable:$true] %s225_s19  ;;  %s2277_s26 = int_to_ptr.hbm [resolvable:$true] %s2276_s26 }
  0x15   : > { %s2278_s28 = scalar_lea.hbm %s2277_s26, 12  ;;  %s2283_s13 = scalar_lea.hbm %s2888_s0, 24 }
  0x16   : > { %p2279_p0 = scmp.ne.s32.totalorder %s2277_s26, %s2278_s28  ;;  %p2284_p4 = scmp.lt.s32.totalorder %s2277_s26, %s2888_s0 }
  0x17   : > { %p2285_p5 = scmp.lt.s32.totalorder %s2283_s13, %s2278_s28 }
  0x18   : > { %p2281_p2 = pnand %p2280_p1, %p2279_p0 }
  0x19   : > { %p2286_p7 = por %p2285_p5, %p2284_p4 }
  0x1a   : > { %p2282_p3 = pneg %p2281_p2 }
  0x1c   : > { %p2287_p8 = pnand %p2286_p7, %p2282_p3 }
  0x1e   : > { %2290 = shalt.err (!%p2287_p8)
}
  0x1f   : > { %2216 = dma.hbm_to_vmem [thread:$0]  (!%p2486_p13), %s224_s17, 192, %s226_s19, %s213_s20  }
  0x20   : > { %p2093_p10 = scmp.ge.s32.totalorder %s2372_s24, 1  ;;  %p230_p0 = scmp.lt.s32.totalorder %s2372_s24, 3 }
  0x22   : > { %p231_p1 = pnand %p2093_p10, %p230_p0 }
  0x23   : > { %s2503_s10 = sand.u32 (!%p231_p1), 1, %s2364_s22  }
  0x24   : > { %234 = sbr.rel (%p231_p1) target bundleno = 842 (0x34a), region = 44  ;;  %s237_s12 = scalar_lea.sflag (!%p231_p1), [#allocation4], %s2503_s10 }
  0x25   : > { %s2895_s30 = smul.u32 (!%p231_p1), 12, %s2503_s10 }
  0x27   : > { %s2509_s15 = scalar_lea.vmem (!%p231_p1), [#allocation3], %s2895_s30 }
  0x29   : > { %2351 = dma.done.wait (%p2466_p6), %s237_s12, 192  }
  0x2a   : > { %2353 = vsyncadd (%p2466_p6), %s237_s12, 4294967104  ;;  %v439_v0 = vld [vmem:[%s2889_s1] sm:$0xf]  ;;  %s2374_s20 = smov 120   ;;  %s2375_s26 = smov 124   ;;  %vm296_vm0 = vcmask 1043456  }
  0x2b   : > { %v2521_v1 = vld [vmem:[%s2889_s1] sm:$0xf]  ;;  %441 = vrot.lane.b32.xlu0 %v439_v0, %s2374_s20  ;;  %v271_v3 = vld [vmem:[%s2509_s15 + $0x8] sm:$0xf]  ;;  %s2376_s29 = smov 116   ;;  %s2377_s16 = smov 104  }
  0x2c   : > { %274 = vrot.lane.b32.xlu1 %v2521_v1, %s2375_s26  ;;  %v2527_v2 = vld [vmem:[%s2509_s15] sm:$0xff]  ;;  %280 = vst [vmem:[#allocation1 + $0x10] ss:$2 sm:$0xff] %v271_v3  ;;  %s2902_s17 = smov 127   ;;  %s2379_s18 = smov 112   ;;  %vm293_vm1 = vcmask 31744  }
  0x2d   : > { %278 = vst [vmem:[#allocation1] ss:$2 sm:$0xff] %v2527_v2  ;;  %v533_v4 = vld [vmem:[%s2889_s1] sm:$0xf]  ;;  %v438_v10 = vld [vmem:[%s2509_s15 + $0x8] sm:$0xf] }
  0x2e   : > { %535 = vrot.lane.b32.xlu2 %v533_v4, %s2376_s29  ;;  %v815_v5 = vld [vmem:[%s2889_s1] sm:$0xf]  ;;  %v532_v15 = vld [vmem:[%s2509_s15 + $0x8] sm:$0xf]  ;;  %s2380_s28 = smov 108   ;;  %s2900_s11 = smov 126  }
  0x2f   : > { %v627_v6 = vld [vmem:[%s2889_s1] sm:$0xf]  ;;  %v626_v19 = vld [vmem:[%s2509_s15 + $0x8] sm:$0xf]  ;;  %s2898_s13 = smov 110   ;;  %s2896_s14 = smov 109  }
  0x30   : > { %v721_v14 = vld [vmem:[%s2889_s1] sm:$0xf]  ;;  %v720_v23 = vld [vmem:[%s2509_s15 + $0x8] sm:$0xf]  ;;  %s2904_s12 = smov 92   ;;  %s2909_s19 = smov 91  }
  0x31   : > { %v814_v27 = vld [vmem:[%s2509_s15 + $0x8] sm:$0xf]  ;;  %v909_v39 = vld [vmem:[%s2889_s1] sm:$0xf]  ;;  %vm290_vm2 = vcmask 1039360   ;;  %vm457_vm3 = vcmask 1031168  }
  0x32   : > { %v908_v31 = vld [vmem:[%s2509_s15 + $0x8] sm:$0xf]  ;;  %v1003_v41 = vld [vmem:[%s2889_s1] sm:$0xf]  ;;  %vm551_vm4 = vcmask 900096   ;;  %vm645_vm5 = vcmask 891904  }
  0x33   : > { %v283_v9 = vld.sshfl [vmem:[#allocation1 + $0x10] sm:$0xff pattern:$0x75316420]  ;;  %v1002_v35 = vld [vmem:[%s2509_s15 + $0x8] sm:$0xf]  ;;  %vm739_vm6 = vcmask 883712  }
  0x34   : > { %817 = vrot.lane.b32.xlu1 %v815_v5, %s2377_s16  ;;  %v282_v7 = vld.sshfl [vmem:[#allocation1 + $0x8] sm:$0xff pattern:$0x75316420]  ;;  %v281_v8 = vld.sshfl [vmem:[#allocation1] sm:$0xff pattern:$0x75316420] }
  0x35   : > { %286 = vrot.lane.b32.xlu0 %v282_v7, %s2902_s17  ;;  %363 = vst [vmem:[#allocation1] ss:$2 sm:$0xff] %v2527_v2  ;;  %vm833_vm7 = vcmask 752640   ;;  %vm927_vm8 = vcmask 744448   ;;  %vm1021_vm9 = vcmask 736256   ;;  %vm1118_vm10 = vcmask 150528  }
  0x36   : > { %365 = vst [vmem:[#allocation1 + $0x10] ss:$2 sm:$0xff] %v271_v3  ;;  %629 = vrot.lane.b32.xlu2 %v627_v6, %s2379_s18  ;;  %s2391_s30 = smov 19   ;;  %vm1120_vm11 = vcmask 863928   ;;  %vm1137_vm12 = vcmask 1043608   ;;  %vm1138_vm13 = vcmask 1047556  }
  0x37   : > { %vm1132_vm14 = vcmask 154624   ;;  %vm1139_vm15 = vmor %vm1138_vm13, %vm1137_vm12  ;;  %s2922_s7 = smov 100  }
  0x3c   : > { %284 = vrot.lane.b32.xlu1 %v281_v8, %s2902_s17  ;;  %v2547_v11 = vld.sshfl [vmem:[#allocation1] sm:$0xff pattern:$0x75316420]  ;;  %v2549_v12 = vld.sshfl [vmem:[#allocation1 + $0x8] sm:$0xff pattern:$0x75316420] }
  0x3d   : > { %288 = vrot.lane.b32.xlu0 %v283_v9, %s2902_s17  ;;  %v2552_v13 = vld.sshfl [vmem:[#allocation1 + $0x10] sm:$0xff pattern:$0x75316420]  ;;  %445 = vst [vmem:[#allocation1] ss:$2 sm:$0xff] %v2527_v2  ;;  %2100 = vmatpush.msk.msra.mxu3 %vm296_vm0, %v2547_v11 }
  0x3e   : > { %447 = vst [vmem:[#allocation1 + $0x10] ss:$2 sm:$0xff] %v438_v10  ;;  %2101 = vmatmul.msk.f32.vlgmr.msra.gmra.mxu3 %vm293_vm1, %v2521_v1 }
  0x44   : > { %v448_v16 = vld.sshfl [vmem:[#allocation1] sm:$0xff pattern:$0x75316420]  ;;  %v449_v17 = vld.sshfl [vmem:[#allocation1 + $0x8] sm:$0xff pattern:$0x75316420] }
  0x45   : > { %723 = vrot.lane.b32.xlu0 %v721_v14, %s2380_s28  ;;  %v450_v18 = vld.sshfl [vmem:[#allocation1 + $0x10] sm:$0xff pattern:$0x75316420]  ;;  %539 = vst [vmem:[#allocation1] ss:$2 sm:$0xff] %v2527_v2  ;;  %451 = vrot.lane.b32.xlu2 %v448_v16, %s2900_s11  ;;  %v2389_v14 = vmov 0  }
  0x46   : > { %455 = vrot.lane.b32.xlu1 %v450_v18, %s2900_s11  ;;  %541 = vst [vmem:[#allocation1 + $0x10] ss:$2 sm:$0xff] %v532_v15  ;;  %2273 = vset.pattern.permute.xlu2 %v2389_v14 }
  0x47   : > { %2274 = vset.pattern.permute.xlu1 %v2389_v14  ;;  %2275 = vset.pattern.permute.xlu0 %v2389_v14 }
  0x4c   : > { %v543_v20 = vld.sshfl [vmem:[#allocation1 + $0x8] sm:$0xff pattern:$0x75316420]  ;;  %v542_v21 = vld.sshfl [vmem:[#allocation1] sm:$0xff pattern:$0x75316420] }
  0x4d   : > { %v544_v22 = vld.sshfl [vmem:[#allocation1 + $0x10] sm:$0xff pattern:$0x75316420]  ;;  %547 = vrot.lane.b32.xlu0 %v543_v20, %s2898_s13  ;;  %633 = vst [vmem:[#allocation1] ss:$2 sm:$0xff] %v2527_v2  ;;  %453 = vrot.lane.b32.xlu2 %v449_v17, %s2900_s11 }
  0x4e   : > { %549 = vrot.lane.b32.xlu1 %v544_v22, %s2898_s13  ;;  %635 = vst [vmem:[#allocation1 + $0x10] ss:$2 sm:$0xff] %v626_v19 }
  0x54   : > { %v637_v24 = vld.sshfl [vmem:[#allocation1 + $0x8] sm:$0xff pattern:$0x75316420]  ;;  %v636_v25 = vld.sshfl [vmem:[#allocation1] sm:$0xff pattern:$0x75316420] }
  0x55   : > { %v638_v26 = vld.sshfl [vmem:[#allocation1 + $0x10] sm:$0xff pattern:$0x75316420]  ;;  %641 = vrot.lane.b32.xlu0 %v637_v24, %s2896_s14  ;;  %727 = vst [vmem:[#allocation1] ss:$2 sm:$0xff] %v2527_v2  ;;  %545 = vrot.lane.b32.xlu2 %v542_v21, %s2898_s13  ;;  %s2907_s13 = smov 90  }
  0x56   : > { %643 = vrot.lane.b32.xlu1 %v638_v26, %s2896_s14  ;;  %729 = vst [vmem:[#allocation1 + $0x10] ss:$2 sm:$0xff] %v720_v23 }
  0x5c   : > { %v730_v28 = vld.sshfl [vmem:[#allocation1] sm:$0xff pattern:$0x75316420]  ;;  %v731_v29 = vld.sshfl [vmem:[#allocation1 + $0x8] sm:$0xff pattern:$0x75316420] }
  0x5d   : > { %639 = vrot.lane.b32.xlu0 %v636_v25, %s2896_s14  ;;  %v732_v30 = vld.sshfl [vmem:[#allocation1 + $0x10] sm:$0xff pattern:$0x75316420]  ;;  %821 = vst [vmem:[#allocation1] ss:$2 sm:$0xff] %v2527_v2  ;;  %735 = vrot.lane.b32.xlu2 %v731_v29, %s2380_s28  ;;  %s2911_s14 = smov 100  }
  0x5e   : > { %733 = vrot.lane.b32.xlu1 %v730_v28, %s2380_s28  ;;  %823 = vst [vmem:[#allocation1 + $0x10] ss:$2 sm:$0xff] %v814_v27 }
  0x64   : > { %v824_v32 = vld.sshfl [vmem:[#allocation1] sm:$0xff pattern:$0x75316420]  ;;  %v825_v33 = vld.sshfl [vmem:[#allocation1 + $0x8] sm:$0xff pattern:$0x75316420] }
  0x65   : > { %737 = vrot.lane.b32.xlu0 %v732_v30, %s2380_s28  ;;  %915 = vst [vmem:[#allocation1] ss:$2 sm:$0xff] %v2527_v2  ;;  %829 = vrot.lane.b32.xlu2 %v825_v33, %s2904_s12  ;;  %v826_v34 = vld.sshfl [vmem:[#allocation1 + $0x10] sm:$0xff pattern:$0x75316420] }
  0x66   : > { %827 = vrot.lane.b32.xlu1 %v824_v32, %s2904_s12  ;;  %917 = vst [vmem:[#allocation1 + $0x10] ss:$2 sm:$0xff] %v908_v31 }
  0x6c   : > { %v919_v36 = vld.sshfl [vmem:[#allocation1 + $0x8] sm:$0xff pattern:$0x75316420]  ;;  %v918_v37 = vld.sshfl [vmem:[#allocation1] sm:$0xff pattern:$0x75316420] }
  0x6d   : > { %921 = vrot.lane.b32.xlu0 %v918_v37, %s2909_s19  ;;  %1009 = vst [vmem:[#allocation1] ss:$2 sm:$0xff] %v2527_v2  ;;  %831 = vrot.lane.b32.xlu2 %v826_v34, %s2904_s12  ;;  %v920_v38 = vld.sshfl [vmem:[#allocation1 + $0x10] sm:$0xff pattern:$0x75316420]  ;;  %s2906_s12 = smov 96  }
  0x6e   : > { %923 = vrot.lane.b32.xlu1 %v919_v36, %s2909_s19  ;;  %1011 = vst [vmem:[#allocation1 + $0x10] ss:$2 sm:$0xff] %v1002_v35 }
  0x74   : > { %v1013_v40 = vld.sshfl [vmem:[#allocation1 + $0x8] sm:$0xff pattern:$0x75316420]  ;;  %v1012_v43 = vld.sshfl [vmem:[#allocation1] sm:$0xff pattern:$0x75316420] }
  0x75   : > { %911 = vrot.lane.b32.xlu0 %v909_v39, %s2911_s14  ;;  %925 = vrot.lane.b32.xlu2 %v920_v38, %s2909_s19  ;;  %v1014_v42 = vld.sshfl [vmem:[#allocation1 + $0x10] sm:$0xff pattern:$0x75316420]  ;;  %s2921_s14 = smov 92  }
  0x76   : > { %1017 = vrot.lane.b32.xlu1 %v1013_v40, %s2907_s13 }
  0x7d   : > { %1005 = vrot.lane.b32.xlu0 %v1003_v41, %s2906_s12  ;;  %1019 = vrot.lane.b32.xlu2 %v1014_v42, %s2907_s13 }
  0x7e   : > { %1015 = vrot.lane.b32.xlu1 %v1012_v43, %s2907_s13  ;;  %s2920_s13 = smov 109  }
  0x88   : > { %v536_v44 = vpop.permute.xlu2 %535 }
  0x90   : > { %v2604_v45 = vpop.permute.xlu2 %629 }
  0x9d   : > { %v442_v46 = vpop.permute.xlu0 %441 }
  0x9e   : > { %v275_v47 = vpop.permute.xlu1 %274 }
  0x9f   : > { %v452_v48 = vpop.permute.xlu2 %451 }
  0xa6   : > { %v2606_v49 = vpop.permute.xlu1 %817 }
  0xa7   : > { %v287_v50 = vpop.permute.xlu0 %286  ;;  %v454_v51 = vpop.permute.xlu2 %453 }
  0xa8   : > { %v458_v57 = vsel %vm457_vm3, %v452_v48, %v454_v51 }
  0xae   : > { %v285_v52 = vpop.permute.xlu1 %284 }
  0xaf   : > { %v289_v53 = vpop.permute.xlu0 %288  ;;  %v291_v54 = vsel %vm290_vm2, %v285_v52, %v287_v50  ;;  %v546_v55 = vpop.permute.xlu2 %545 }
  0xb0   : > { %2098 = vmatpush.msk.msra.mxu2 %vm296_vm0, %v289_v53  ;;  %2094 = vmatpush.msk.msra.mxu0 %vm296_vm0, %v291_v54  ;;  %v292_v56 = vsel %vm290_vm2, %v287_v50, %v289_v53  ;;  %v2390_v54 = vmov 0.0  }
  0xb1   : > { %2096 = vmatpush.msk.msra.mxu1 %vm296_vm0, %v292_v56  ;;  %2099 = vmatmul.msk.f32.vlgmr.msra.gmra.mxu2 %vm293_vm1, %v275_v47  ;;  %1119 = vst.msk [vmem:[#allocation2] sm:$0xf] %vm1118_vm10, %v2390_v54  ;;  %vm1141_vm10 = vcmask 707584  }
  0xb2   : > { %2095 = vmatmul.msk.f32.vlgmr.msra.gmra.mxu0 %vm293_vm1, %v275_v47  ;;  %2097 = vmatmul.msk.f32.vlgmr.msra.gmra.mxu1 %vm293_vm1, %v275_v47  ;;  %1121 = vst.msk [vmem:[#allocation2 + $0x8] sm:$0xf] %vm1120_vm11, %v2390_v54 }
  0xb3   : > { %2106 = vmatpush.msk.msrb.mxu2 %vm296_vm0, %v458_v57  ;;  %2102 = vmatpush.msk.msrb.mxu0 %vm296_vm0, %v2549_v12  ;;  %v1095_v12 = vld [vmem:[%s2891_s3] sm:$0xf] }
  0xb4   : > { %2104 = vmatpush.msk.msrb.mxu1 %vm296_vm0, %v2552_v13  ;;  %1098 = vperm.xlu2 %2273, %v1095_v12  }
  0xb7   : > { %v724_v58 = vpop.permute.xlu0 %723  ;;  %v736_v60 = vpop.permute.xlu2 %735 }
  0xb8   : > { %v456_v59 = vpop.permute.xlu1 %455 }
  0xb9   : > { %2107 = vmatmul.msk.f32.vlgmr.msrb.gmra.mxu2 %vm293_vm1, %v442_v46  ;;  %v459_v61 = vsel %vm457_vm3, %v454_v51, %v456_v59  ;;  %2110 = vmatpush.msk.msra.mxu0 %vm296_vm0, %v456_v59 }
  0xba   : > { %2108 = vmatpush.msk.msrb.mxu3 %vm296_vm0, %v459_v61  ;;  %2103 = vmatmul.msk.f32.vlgmr.msrb.gmra.mxu0 %vm293_vm1, %v2521_v1 }
  0xbb   : > { %2105 = vmatmul.msk.f32.vlgmr.msrb.gmra.mxu1 %vm293_vm1, %v2521_v1  ;;  %2109 = vmatmul.msk.f32.vlgmr.msrb.gmra.mxu3 %vm293_vm1, %v442_v46 }
  0xbf   : > { %v548_v62 = vpop.permute.xlu0 %547  ;;  %v830_v3 = vpop.permute.xlu2 %829 }
  0xc0   : > { %v550_v63 = vpop.permute.xlu1 %549  ;;  %v552_v0 = vsel %vm551_vm4, %v546_v55, %v548_v62 }
  0xc1   : > { %v553_v2 = vsel %vm551_vm4, %v548_v62, %v550_v63  ;;  %2112 = vmatpush.msk.msra.mxu1 %vm296_vm0, %v552_v0  ;;  %2116 = vmatpush.msk.msra.mxu3 %vm296_vm0, %v550_v63  ;;  %v394_v35 = vpop.f32.mrf.mxu3 }
  0xc2   : > { %2114 = vmatpush.msk.msra.mxu2 %vm296_vm0, %v553_v2  ;;  %2111 = vmatmul.msk.f32.vlgmr.msra.gmra.mxu0 %vm293_vm1, %v442_v46 }
  0xc3   : > { %2113 = vmatmul.msk.f32.vlgmr.msra.gmra.mxu1 %vm293_vm1, %v536_v44  ;;  %2115 = vmatmul.msk.f32.vlgmr.msra.gmra.mxu2 %vm293_vm1, %v536_v44 }
  0xc4   : > { %2117 = vmatmul.msk.f32.vlgmr.msra.gmra.mxu3 %vm293_vm1, %v536_v44 }
  0xc7   : > { %v642_v1 = vpop.permute.xlu0 %641  ;;  %v832_v6 = vpop.permute.xlu2 %831 }
  0xc8   : > { %v644_v4 = vpop.permute.xlu1 %643  ;;  %v835_v11 = vsel %vm833_vm7, %v830_v3, %v832_v6 }
  0xc9   : > { %v647_v5 = vsel %vm645_vm5, %v642_v1, %v644_v4  ;;  %2122 = vmatpush.msk.msrb.mxu2 %vm296_vm0, %v644_v4 }
  0xca   : > { %2120 = vmatpush.msk.msrb.mxu1 %vm296_vm0, %v647_v5 }
  0xcb   : > { %2121 = vmatmul.msk.f32.vlgmr.msrb.gmra.mxu1 %vm293_vm1, %v2604_v45  ;;  %2123 = vmatmul.msk.f32.vlgmr.msrb.gmra.mxu2 %vm293_vm1, %v2604_v45 }
  0xcf   : > { %v640_v7 = vpop.permute.xlu0 %639  ;;  %v926_v13 = vpop.permute.xlu2 %925 }
  0xd0   : > { %v646_v8 = vsel %vm645_vm5, %v640_v7, %v642_v1  ;;  %v734_v9 = vpop.permute.xlu1 %733 }
  0xd1   : > { %v740_v10 = vsel %vm739_vm6, %v734_v9, %v736_v60  ;;  %2118 = vmatpush.msk.msrb.mxu0 %vm296_vm0, %v646_v8  ;;  %v1107_v8 = vld [vmem:[%s2893_s5] sm:$0x7] }
  0xd2   : > { %2124 = vmatpush.msk.msrb.mxu3 %vm296_vm0, %v740_v10  ;;  %2119 = vmatmul.msk.f32.vlgmr.msrb.gmra.mxu0 %vm293_vm1, %v2604_v45 }
  0xd3   : > { %2125 = vmatmul.msk.f32.vlgmr.msrb.gmra.mxu3 %vm293_vm1, %v724_v58 }
  0xd4   : > { %2132 = vmatpush.msk.msra.mxu3 %vm296_vm0, %v835_v11 }
  0xd6   : > { %2140 = vmatpush.msk.msrb.mxu3 %vm296_vm0, %v926_v13 }
  0xd7   : > { %v738_v15 = vpop.permute.xlu0 %737  ;;  %v1020_v23 = vpop.permute.xlu2 %1019 }
  0xd8   : > { %v741_v16 = vsel %vm739_vm6, %v736_v60, %v738_v15  ;;  %v828_v17 = vpop.permute.xlu1 %827  ;;  %2128 = vmatpush.msk.msra.mxu1 %vm296_vm0, %v738_v15  ;;  %v1110_v15 = vperm.slane %v1107_v8, 1 }
  0xd9   : > { %v834_v18 = vsel %vm833_vm7, %v828_v17, %v830_v3  ;;  %2126 = vmatpush.msk.msra.mxu0 %vm296_vm0, %v741_v16  ;;  %2129 = vmatmul.msk.f32.vlgmr.msra.gmra.mxu1 %vm293_vm1, %v724_v58 }
  0xda   : > { %2130 = vmatpush.msk.msra.mxu2 %vm296_vm0, %v834_v18  ;;  %2127 = vmatmul.msk.f32.vlgmr.msra.gmra.mxu0 %vm293_vm1, %v724_v58 }
  0xdb   : > { %2131 = vmatmul.msk.f32.vlgmr.msra.gmra.mxu2 %vm293_vm1, %v2606_v49  ;;  %2133 = vmatmul.msk.f32.vlgmr.msra.gmra.mxu3 %vm293_vm1, %v2606_v49 }
  0xdc   : > { %2134 = vmatpush.msk.msrb.mxu0 %vm296_vm0, %v832_v6 }
  0xdf   : > { %v922_v19 = vpop.permute.xlu0 %921 }
  0xe0   : > { %v924_v20 = vpop.permute.xlu1 %923 }
  0xe1   : > { %v928_v21 = vsel %vm927_vm8, %v922_v19, %v924_v20  ;;  %v929_v22 = vsel %vm927_vm8, %v924_v20, %v926_v13 }
  0xe2   : > { %2136 = vmatpush.msk.msrb.mxu1 %vm296_vm0, %v928_v21  ;;  %2135 = vmatmul.msk.f32.vlgmr.msrb.gmra.mxu0 %vm293_vm1, %v2606_v49 }
  0xe3   : > { %2138 = vmatpush.msk.msrb.mxu2 %vm296_vm0, %v929_v22  ;;  %v1109_v22 = vperm.slane %v1107_v8, 0 }
  0xe5   : > { %2146 = vmatpush.msk.msra.mxu2 %vm296_vm0, %v1020_v23 }
  0xe7   : > { %v912_v24 = vpop.permute.xlu0 %911 }
  0xe8   : > { %v1018_v25 = vpop.permute.xlu1 %1017  ;;  %2137 = vmatmul.msk.f32.vlgmr.msrb.gmra.mxu1 %vm293_vm1, %v912_v24  ;;  %2139 = vmatmul.msk.f32.vlgmr.msrb.gmra.mxu2 %vm293_vm1, %v912_v24 }
  0xe9   : > { %v1023_v26 = vsel %vm1021_vm9, %v1018_v25, %v1020_v23  ;;  %2141 = vmatmul.msk.f32.vlgmr.msrb.gmra.mxu3 %vm293_vm1, %v912_v24 }
  0xea   : > { %2144 = vmatpush.msk.msra.mxu1 %vm296_vm0, %v1023_v26 }
  0xef   : > { %v1006_v27 = vpop.permute.xlu0 %1005 }
  0xf0   : > { %v1016_v28 = vpop.permute.xlu1 %1015  ;;  %2145 = vmatmul.msk.f32.vlgmr.msra.gmra.mxu1 %vm293_vm1, %v1006_v27  ;;  %2147 = vmatmul.msk.f32.vlgmr.msra.gmra.mxu2 %vm293_vm1, %v1006_v27 }
  0xf1   : > { %v1022_v29 = vsel %vm1021_vm9, %v1016_v28, %v1018_v25 }
  0xf2   : > { %2142 = vmatpush.msk.msra.mxu0 %vm296_vm0, %v1022_v29  ;;  %v1111_v29 = vperm.slane %v1107_v8, 2 }
  0xf3   : > { %2143 = vmatmul.msk.f32.vlgmr.msra.gmra.mxu0 %vm293_vm1, %v1006_v27 }
 0x10e   : > { %v1099_v9 = vpop.permute.xlu2 %1098 }
 0x12f   : > { %v340_v30 = vpop.f32.mrf.mxu1  ;;  %v320_v31 = vpop.f32.mrf.mxu0 }
 0x130   : > { %v395_v50 = vadd.f32 %v394_v35, %v320_v31  ;;  %v1404_v35 = vld [vmem:[%s2890_s2] sm:$0xf] }
 0x134   : > { %v360_v32 = vpop.f32.mrf.mxu2 }
 0x137   : > { %v414_v34 = vpop.f32.mrf.mxu0 }
 0x138   : > { %v434_v33 = vpop.f32.mrf.mxu1  ;;  %v415_v47 = vadd.f32 %v414_v34, %v340_v30  ;;  %v1311_v34 = vld [vmem:[%s2890_s2] sm:$0xf] }
 0x139   : > { %v435_v56 = vadd.f32 %v434_v33, %v360_v32 }
 0x13c   : > { %v485_v36 = vpop.f32.mrf.mxu2 }
 0x13d   : > { %v528_v52 = vadd.f32 %v485_v36, %v395_v50  ;;  %v2704_v36 = vld [vmem:[%s2890_s2] sm:$0xf] }
 0x13e   : > { %v505_v37 = vpop.f32.mrf.mxu3 }
 0x13f   : > { %v525_v39 = vpop.f32.mrf.mxu0  ;;  %v529_v49 = vadd.f32 %v505_v37, %v415_v47  ;;  %v1590_v37 = vld [vmem:[%s2890_s2] sm:$0xf] }
 0x140   : > { %v579_v38 = vpop.f32.mrf.mxu1  ;;  %v530_v60 = vadd.f32 %v525_v39, %v435_v56  ;;  %v1683_v39 = vld [vmem:[%s2890_s2] sm:$0xf] }
 0x141   : > { %v622_v58 = vadd.f32 %v579_v38, %v528_v52  ;;  %v1497_v38 = vld [vmem:[%s2890_s2] sm:$0xf] }
 0x146   : > { %v599_v40 = vpop.f32.mrf.mxu2 }
 0x147   : > { %v619_v42 = vpop.f32.mrf.mxu3  ;;  %v623_v51 = vadd.f32 %v599_v40, %v529_v49 }
 0x148   : > { %v693_v43 = vpop.f32.mrf.mxu1  ;;  %v624_v0 = vadd.f32 %v619_v42, %v530_v60 }
 0x149   : > { %v717_v57 = vadd.f32 %v693_v43, %v623_v51 }
 0x14e   : > { %v713_v44 = vpop.f32.mrf.mxu2 }
 0x14f   : > { %v673_v41 = vpop.f32.mrf.mxu0  ;;  %v718_v4 = vadd.f32 %v713_v44, %v624_v0 }
 0x150   : > { %v716_v63 = vadd.f32 %v673_v41, %v622_v58 }
 0x156   : > { %v767_v45 = vpop.f32.mrf.mxu3  ;;  %v807_v46 = vpop.f32.mrf.mxu1 }
 0x157   : > { %v787_v48 = vpop.f32.mrf.mxu0  ;;  %v810_v3 = vadd.f32 %v767_v45, %v716_v63  ;;  %v812_v10 = vadd.f32 %v807_v46, %v718_v4 }
 0x158   : > { %v811_v61 = vadd.f32 %v787_v48, %v717_v57 }
 0x15e   : > { %v861_v53 = vpop.f32.mrf.mxu2  ;;  %v881_v59 = vpop.f32.mrf.mxu3 }
 0x15f   : > { %v901_v62 = vpop.f32.mrf.mxu0  ;;  %v905_v2 = vadd.f32 %v881_v59, %v811_v61  ;;  %v904_v6 = vadd.f32 %v861_v53, %v810_v3 }
 0x160   : > { %v906_v14 = vadd.f32 %v901_v62, %v812_v10  ;;  %v1776_v10 = vld [vmem:[%s2890_s2] sm:$0xf] }
 0x165   : > { %v955_v55 = vpop.f32.mrf.mxu1 }
 0x166   : > { %v998_v12 = vadd.f32 %v955_v55, %v904_v6 }
 0x16b   : > { %v975_v1 = vpop.f32.mrf.mxu2 }
 0x16c   : > { %v999_v5 = vadd.f32 %v975_v1, %v905_v2  ;;  %v995_v13 = vpop.f32.mrf.mxu3 }
 0x16d   : > { %v1069_v7 = vpop.f32.mrf.mxu1  ;;  %v1000_v19 = vadd.f32 %v995_v13, %v906_v14 }
 0x16e   : > { %v1093_v11 = vadd.f32 %v1069_v7, %v999_v5 }
 0x170   : > { %v1102_v16 = vadd.f32 %v1099_v9, %v1093_v11  ;;  %v1049_v17 = vpop.f32.mrf.mxu0 }
 0x171   : > { %v1092_v18 = vadd.f32 %v1049_v17, %v998_v12 }
 0x172   : > { %v1105_v20 = vmax.f32 %v1102_v16, 0.0 }
 0x173   : > { %v1101_v21 = vadd.f32 %v1099_v9, %v1092_v18  ;;  %v1089_v23 = vpop.f32.mrf.mxu2  ;;  %v1869_v18 = vld [vmem:[%s2890_s2] sm:$0xf] }
 0x174   : > { %v1116_v24 = vmul.f32 %v1110_v15, %v1105_v20  ;;  %v1094_v25 = vadd.f32 %v1089_v23, %v1000_v19 }
 0x175   : > { %v1104_v26 = vmax.f32 %v1101_v21, 0.0 }
 0x176   : > { %v1103_v27 = vadd.f32 %v1099_v9, %v1094_v25  ;;  %v1125_v28 = vrot.slane %v1116_v24, 4 }
 0x177   : > { %v1115_v30 = vmul.f32 %v1109_v22, %v1104_v26 }
 0x178   : > { %v1106_v31 = vmax.f32 %v1103_v27, 0.0 }
 0x179   : > { %v1126_v32 = vsel %vm296_vm0, %v1115_v30, %v1125_v28 }
 0x17a   : > { %1127 = vrot.lane.b32.xlu0 %v1126_v32, %s2391_s30  ;;  %v1117_v33 = vmul.f32 %v1111_v29, %v1106_v31 }
 0x17c   : > { %1129 = vrot.lane.b32.xlu1 %v1117_v33, %s2391_s30  ;;  %s2923_s30 = smov 91  }
 0x182   : > { %1313 = vrot.lane.b32.xlu0 %v1311_v34, %s2374_s20 }
 0x184   : > { %1149 = vrot.lane.b32.xlu1 %v2704_v36, %s2375_s26  ;;  %s2917_s26 = smov 127  }
 0x18a   : > { %1406 = vrot.lane.b32.xlu0 %v1404_v35, %s2376_s29  ;;  %s2925_s29 = smov 96  }
 0x18c   : > { %1499 = vrot.lane.b32.xlu1 %v1497_v38, %s2379_s18  ;;  %s2919_s18 = smov 110  }
 0x192   : > { %1592 = vrot.lane.b32.xlu0 %v1590_v37, %s2380_s28 }
 0x194   : > { %1685 = vrot.lane.b32.xlu1 %v1683_v39, %s2377_s16  ;;  %s2918_s16 = smov 126  }
 0x1ec   : > { %v1128_v40 = vpop.permute.xlu0 %1127 }
 0x1ed   : > { %v1131_v41 = vrot.slane %v1128_v40, 4 }
 0x1ee   : > { %v1130_v42 = vpop.permute.xlu1 %1129 }
 0x1ef   : > { %v1133_v43 = vsel %vm1132_vm14, %v1131_v41, %v1128_v40  ;;  %v1134_v44 = vsel %vm1132_vm14, %v1131_v41, %v1130_v42 }
 0x1f0   : > { %1140 = vst.msk [vmem:[#allocation2] sm:$0xff] %vm1139_vm15, %v1133_v43 }
 0x1f1   : > { %1142 = vst.msk [vmem:[#allocation2 + $0x8] sm:$0xf] %vm1141_vm10, %v1134_v44 }
 0x1f4   : > { %v1314_v19 = vpop.permute.xlu0 %1313 }
 0x1f6   : > { %v1150_v23 = vpop.permute.xlu1 %1149 }
 0x1f7   : > { %v2720_v45 = vld [vmem:[#allocation2] sm:$0xff] }
 0x1f8   : > { %1153 = vst [vmem:[#allocation1] ss:$2 sm:$0xff] %v2720_v45  ;;  %v1146_v46 = vld [vmem:[#allocation2 + $0x8] sm:$0xf] }
 0x1f9   : > { %1155 = vst [vmem:[#allocation1 + $0x10] ss:$2 sm:$0xff] %v1146_v46  ;;  %v1310_v52 = vld [vmem:[#allocation2 + $0x8] sm:$0xf] }
 0x1fa   : > { %v1403_v56 = vld [vmem:[#allocation2 + $0x8] sm:$0xf] }
 0x1fb   : > { %v1496_v60 = vld [vmem:[#allocation2 + $0x8] sm:$0xf] }
 0x1fc   : > { %v1589_v0 = vld [vmem:[#allocation2 + $0x8] sm:$0xf]  ;;  %v1407_v21 = vpop.permute.xlu0 %1406 }
 0x1fd   : > { %v1682_v4 = vld [vmem:[#allocation2 + $0x8] sm:$0xf] }
 0x1fe   : > { %v1775_v8 = vld [vmem:[#allocation2 + $0x8] sm:$0xf]  ;;  %v1500_v26 = vpop.permute.xlu1 %1499 }
 0x1ff   : > { %v1157_v47 = vld.sshfl [vmem:[#allocation1 + $0x8] sm:$0xff pattern:$0x75316420]  ;;  %v1156_v48 = vld.sshfl [vmem:[#allocation1] sm:$0xff pattern:$0x75316420] }
 0x200   : > { %1161 = vrot.lane.b32.xlu0 %v1157_v47, %s2917_s26  ;;  %1159 = vrot.lane.b32.xlu2 %v1156_v48, %s2917_s26  ;;  %1235 = vst [vmem:[#allocation1] ss:$2 sm:$0xff] %v2720_v45  ;;  %v1158_v49 = vld.sshfl [vmem:[#allocation1 + $0x10] sm:$0xff pattern:$0x75316420] }
 0x201   : > { %1237 = vst [vmem:[#allocation1 + $0x10] ss:$2 sm:$0xff] %v1146_v46  ;;  %v1868_v13 = vld [vmem:[#allocation2 + $0x8] sm:$0xf] }
 0x204   : > { %v1593_v24 = vpop.permute.xlu0 %1592 }
 0x206   : > { %v1686_v31 = vpop.permute.xlu1 %1685 }
 0x207   : > { %v2726_v50 = vld.sshfl [vmem:[#allocation1 + $0x8] sm:$0xff pattern:$0x75316420]  ;;  %v1238_v51 = vld.sshfl [vmem:[#allocation1] sm:$0xff pattern:$0x75316420] }
 0x208   : > { %1163 = vrot.lane.b32.xlu2 %v1158_v49, %s2917_s26  ;;  %2154 = vmatpush.msk.msrb.mxu2 %vm296_vm0, %v1238_v51  ;;  %1317 = vst [vmem:[#allocation1] ss:$2 sm:$0xff] %v2720_v45  ;;  %v2733_v53 = vld.sshfl [vmem:[#allocation1 + $0x10] sm:$0xff pattern:$0x75316420] }
 0x209   : > { %2155 = vmatmul.msk.f32.vlgmr.msrb.gmra.mxu2 %vm293_vm1, %v2704_v36  ;;  %1319 = vst [vmem:[#allocation1 + $0x10] ss:$2 sm:$0xff] %v1310_v52  ;;  %v1960_v52 = vld [vmem:[%s2892_s4] sm:$0xf] }
 0x20f   : > { %v1321_v54 = vld.sshfl [vmem:[#allocation1 + $0x8] sm:$0xff pattern:$0x75316420]  ;;  %v1320_v55 = vld.sshfl [vmem:[#allocation1] sm:$0xff pattern:$0x75316420] }
 0x210   : > { %1325 = vrot.lane.b32.xlu1 %v1321_v54, %s2918_s16  ;;  %1323 = vrot.lane.b32.xlu0 %v1320_v55, %s2918_s16  ;;  %1410 = vst [vmem:[#allocation1] ss:$2 sm:$0xff] %v2720_v45  ;;  %v1322_v57 = vld.sshfl [vmem:[#allocation1 + $0x10] sm:$0xff pattern:$0x75316420] }
 0x211   : > { %1327 = vrot.lane.b32.xlu2 %v1322_v57, %s2918_s16  ;;  %1412 = vst [vmem:[#allocation1 + $0x10] ss:$2 sm:$0xff] %v1403_v56  ;;  %v1144_v54 = vld [vmem:[%s2509_s15 + $0x8] sm:$0xf] }
 0x217   : > { %v1413_v58 = vld.sshfl [vmem:[#allocation1] sm:$0xff pattern:$0x75316420]  ;;  %v1414_v59 = vld.sshfl [vmem:[#allocation1 + $0x8] sm:$0xff pattern:$0x75316420] }
 0x218   : > { %1416 = vrot.lane.b32.xlu1 %v1413_v58, %s2919_s18  ;;  %1503 = vst [vmem:[#allocation1] ss:$2 sm:$0xff] %v2720_v45  ;;  %v1415_v61 = vld.sshfl [vmem:[#allocation1 + $0x10] sm:$0xff pattern:$0x75316420] }
 0x219   : > { %1418 = vrot.lane.b32.xlu2 %v1414_v59, %s2919_s18  ;;  %1505 = vst [vmem:[#allocation1 + $0x10] ss:$2 sm:$0xff] %v1496_v60 }
 0x21f   : > { %v1507_v62 = vld.sshfl [vmem:[#allocation1 + $0x8] sm:$0xff pattern:$0x75316420]  ;;  %v1506_v63 = vld.sshfl [vmem:[#allocation1] sm:$0xff pattern:$0x75316420] }
 0x220   : > { %1420 = vrot.lane.b32.xlu1 %v1415_v61, %s2919_s18  ;;  %1511 = vrot.lane.b32.xlu0 %v1507_v62, %s2920_s13  ;;  %1596 = vst [vmem:[#allocation1] ss:$2 sm:$0xff] %v2720_v45  ;;  %v1508_v2 = vld.sshfl [vmem:[#allocation1 + $0x10] sm:$0xff pattern:$0x75316420] }
 0x221   : > { %1509 = vrot.lane.b32.xlu2 %v1506_v63, %s2920_s13  ;;  %1598 = vst [vmem:[#allocation1 + $0x10] ss:$2 sm:$0xff] %v1589_v0 }
 0x227   : > { %v1600_v3 = vld.sshfl [vmem:[#allocation1 + $0x8] sm:$0xff pattern:$0x75316420]  ;;  %v1599_v1 = vld.sshfl [vmem:[#allocation1] sm:$0xff pattern:$0x75316420] }
 0x228   : > { %1604 = vrot.lane.b32.xlu1 %v1600_v3, %s2380_s28  ;;  %1602 = vrot.lane.b32.xlu0 %v1599_v1, %s2380_s28  ;;  %1689 = vst [vmem:[#allocation1] ss:$2 sm:$0xff] %v2720_v45  ;;  %v1601_v5 = vld.sshfl [vmem:[#allocation1 + $0x10] sm:$0xff pattern:$0x75316420] }
 0x229   : > { %1513 = vrot.lane.b32.xlu2 %v1508_v2, %s2920_s13  ;;  %1691 = vst [vmem:[#allocation1 + $0x10] ss:$2 sm:$0xff] %v1682_v4 }
 0x22f   : > { %v1692_v6 = vld.sshfl [vmem:[#allocation1] sm:$0xff pattern:$0x75316420]  ;;  %v1693_v7 = vld.sshfl [vmem:[#allocation1 + $0x8] sm:$0xff pattern:$0x75316420] }
 0x230   : > { %1695 = vrot.lane.b32.xlu1 %v1692_v6, %s2921_s14  ;;  %1782 = vst [vmem:[#allocation1] ss:$2 sm:$0xff] %v2720_v45  ;;  %v1694_v9 = vld.sshfl [vmem:[#allocation1 + $0x10] sm:$0xff pattern:$0x75316420] }
 0x231   : > { %1606 = vrot.lane.b32.xlu2 %v1601_v5, %s2380_s28  ;;  %1699 = vrot.lane.b32.xlu0 %v1694_v9, %s2921_s14  ;;  %1784 = vst [vmem:[#allocation1 + $0x10] ss:$2 sm:$0xff] %v1775_v8  ;;  %s2924_s28 = smov 90  }
 0x237   : > { %v1786_v11 = vld.sshfl [vmem:[#allocation1 + $0x8] sm:$0xff pattern:$0x75316420]  ;;  %v1785_v12 = vld.sshfl [vmem:[#allocation1] sm:$0xff pattern:$0x75316420] }
 0x238   : > { %1778 = vrot.lane.b32.xlu1 %v1776_v10, %s2922_s7  ;;  %1875 = vst [vmem:[#allocation1] ss:$2 sm:$0xff] %v2720_v45  ;;  %v1787_v14 = vld.sshfl [vmem:[#allocation1 + $0x10] sm:$0xff pattern:$0x75316420]  ;;  %s2003_s7 = scalar_lea.sflag [#allocation5], %s2503_s10 }
 0x239   : > { %1697 = vrot.lane.b32.xlu2 %v1693_v7, %s2921_s14  ;;  %1790 = vrot.lane.b32.xlu0 %v1786_v11, %s2923_s30  ;;  %1877 = vst [vmem:[#allocation1 + $0x10] ss:$2 sm:$0xff] %v1868_v13 }
 0x23f   : > { %v1879_v15 = vld.sshfl [vmem:[#allocation1 + $0x8] sm:$0xff pattern:$0x75316420]  ;;  %v1878_v16 = vld.sshfl [vmem:[#allocation1] sm:$0xff pattern:$0x75316420] }
 0x240   : > { %1883 = vrot.lane.b32.xlu1 %v1879_v15, %s2924_s28  ;;  %v1880_v17 = vld.sshfl [vmem:[#allocation1 + $0x10] sm:$0xff pattern:$0x75316420] }
 0x241   : > { %1788 = vrot.lane.b32.xlu2 %v1785_v12, %s2923_s30  ;;  %1881 = vrot.lane.b32.xlu0 %v1878_v16, %s2924_s28  ;;  %1973 = vst [vmem:[#allocation1 + $0x10] ss:$2 sm:$0xff] %v1144_v54 }
 0x248   : > { %1963 = vperm.xlu1 %2274, %v1960_v52   ;;  %v1976_v62 = vld.sshfl [vmem:[#allocation1 + $0x10] sm:$0xff pattern:$0x75316420] }
 0x249   : > { %1792 = vrot.lane.b32.xlu2 %v1787_v14, %s2923_s30  ;;  %1885 = vrot.lane.b32.xlu0 %v1880_v17, %s2924_s28 }
 0x251   : > { %1871 = vrot.lane.b32.xlu2 %v1869_v18, %s2925_s29  ;;  %1981 = vrot.lane.b32.xlu0 %v1976_v62, %s2920_s13  ;;  %s2326_s29 = scalar_lea.hbm %s2894_s6, 24 }
 0x25a   : > { %v1160_v20 = vpop.permute.xlu2 %1159 }
 0x262   : > { %v1164_v22 = vpop.permute.xlu2 %1163 }
 0x263   : > { %2152 = vmatpush.msk.msrb.mxu1 %vm296_vm0, %v1164_v22 }
 0x264   : > { %2153 = vmatmul.msk.f32.vlgmr.msrb.gmra.mxu1 %vm293_vm1, %v1150_v23 }
 0x26b   : > { %v1328_v25 = vpop.permute.xlu2 %1327 }
 0x272   : > { %v1162_v27 = vpop.permute.xlu0 %1161 }
 0x273   : > { %v1165_v28 = vsel %vm290_vm2, %v1160_v20, %v1162_v27  ;;  %v1166_v29 = vsel %vm290_vm2, %v1162_v27, %v1164_v22  ;;  %v1419_v30 = vpop.permute.xlu2 %1418 }
 0x274   : > { %2148 = vmatpush.msk.msra.mxu3 %vm296_vm0, %v1165_v28  ;;  %2150 = vmatpush.msk.msrb.mxu0 %vm296_vm0, %v1166_v29 }
 0x275   : > { %2149 = vmatmul.msk.f32.vlgmr.msra.gmra.mxu3 %vm293_vm1, %v1150_v23  ;;  %2151 = vmatmul.msk.f32.vlgmr.msrb.gmra.mxu0 %vm293_vm1, %v1150_v23 }
 0x276   : > { %2156 = vmatpush.msk.msrb.mxu3 %vm296_vm0, %v2726_v50  ;;  %2158 = vmatpush.msk.msra.mxu0 %vm296_vm0, %v2733_v53  ;;  %v1143_v53 = vld [vmem:[%s2509_s15] sm:$0xff]  ;;  %s2208_s15 = smul.u32 12, %s2448_s25 }
 0x277   : > { %1971 = vst [vmem:[#allocation1] ss:$2 sm:$0xff] %v1143_v53  ;;  %s2926_s25 = smul.u32 12, %s2503_s10 }
 0x278   : > { %2164 = vmatpush.msk.msra.mxu3 %vm296_vm0, %v1328_v25 }
 0x279   : > { %s269_s14 = scalar_lea.vmem [#allocation6], %s2926_s25 }
 0x27a   : > { %s2016_s19 = sshll.u32 %s269_s14, 4  ;;  %s2017_s19 = int_to_ptr.vmem [resolvable:$true] %s2016_s19 }
 0x27b   : > { %v1510_v32 = vpop.permute.xlu2 %1509 }
 0x27d   : > { %2157 = vmatmul.msk.f32.vlgmr.msrb.gmra.mxu3 %vm293_vm1, %v2704_v36  ;;  %2159 = vmatmul.msk.f32.vlgmr.msra.gmra.mxu0 %vm293_vm1, %v2704_v36 }
 0x27e   : > { %v1974_v60 = vld.sshfl [vmem:[#allocation1] sm:$0xff pattern:$0x75316420]  ;;  %v1975_v61 = vld.sshfl [vmem:[#allocation1 + $0x8] sm:$0xff pattern:$0x75316420] }
 0x27f   : > { %1977 = vrot.lane.b32.xlu1 %v1974_v60, %s2920_s13  ;;  %1979 = vrot.lane.b32.xlu2 %v1975_v61, %s2920_s13  ;;  %s2014_s13 = scalar_lea.hbm %s2894_s6, %s2208_s15 }
 0x280   : > { %s2018_s11 = sshll.u32 %s2014_s13, 4  ;;  %s2019_s11 = int_to_ptr.hbm [resolvable:$true] %s2018_s11 }
 0x281   : > { %s2320_s30 = sshra.s32 %s2019_s11, 4  ;;  %s2321_s30 = int_to_ptr.hbm [resolvable:$true] %s2320_s30 }
 0x282   : > { %v1326_v33 = vpop.permute.xlu1 %1325  ;;  %v1324_v34 = vpop.permute.xlu0 %1323  ;;  %s2322_s28 = scalar_lea.hbm %s2321_s30, 12  ;;  %p2327_p3 = scmp.lt.s32.totalorder %s2321_s30, %s2894_s6 }
 0x283   : > { %v1330_v35 = vsel %vm457_vm3, %v1326_v33, %v1328_v25  ;;  %v1329_v37 = vsel %vm457_vm3, %v1324_v34, %v1326_v33  ;;  %v1514_v38 = vpop.permute.xlu2 %1513  ;;  %p2323_p6 = scmp.ne.s32.totalorder %s2321_s30, %s2322_s28  ;;  %p2328_p4 = scmp.lt.s32.totalorder %s2326_s29, %s2322_s28 }
 0x284   : > { %2160 = vmatpush.msk.msra.mxu1 %vm296_vm0, %v1329_v37  ;;  %2162 = vmatpush.msk.msra.mxu2 %vm296_vm0, %v1330_v35 }
 0x285   : > { %2161 = vmatmul.msk.f32.vlgmr.msra.gmra.mxu1 %vm293_vm1, %v1314_v19  ;;  %2163 = vmatmul.msk.f32.vlgmr.msra.gmra.mxu2 %vm293_vm1, %v1314_v19  ;;  %p2324_p13 = pnand %p2323_p6, %p2473_p11  ;;  %p2329_p5 = por %p2328_p4, %p2327_p3 }
 0x286   : > { %2165 = vmatmul.msk.f32.vlgmr.msra.gmra.mxu3 %vm293_vm1, %v1314_v19 }
 0x287   : > { %p2325_p2 = pneg %p2324_p13 }
 0x289   : > { %p2330_p7 = pnand %p2329_p5, %p2325_p2 }
 0x28a   : > { %v1417_v39 = vpop.permute.xlu1 %1416 }
 0x28b   : > { %v1422_v36 = vsel %vm551_vm4, %v1417_v39, %v1419_v30  ;;  %v1607_v40 = vpop.permute.xlu2 %1606 }
 0x28c   : > { %2166 = vmatpush.msk.msrb.mxu0 %vm296_vm0, %v1422_v36  ;;  %v1266_v12 = vpop.f32.mrf.mxu2 }
 0x28d   : > { %2167 = vmatmul.msk.f32.vlgmr.msrb.gmra.mxu0 %vm293_vm1, %v1407_v21 }
 0x292   : > { %v1421_v41 = vpop.permute.xlu1 %1420  ;;  %v1512_v42 = vpop.permute.xlu0 %1511 }
 0x293   : > { %v1423_v43 = vsel %vm551_vm4, %v1419_v30, %v1421_v41  ;;  %v1515_v44 = vsel %vm645_vm5, %v1510_v32, %v1512_v42  ;;  %v1516_v45 = vsel %vm645_vm5, %v1512_v42, %v1514_v38  ;;  %2170 = vmatpush.msk.msrb.mxu2 %vm296_vm0, %v1421_v41  ;;  %v1698_v46 = vpop.permute.xlu2 %1697 }
 0x294   : > { %2168 = vmatpush.msk.msrb.mxu1 %vm296_vm0, %v1423_v43  ;;  %2171 = vmatmul.msk.f32.vlgmr.msrb.gmra.mxu2 %vm293_vm1, %v1407_v21 }
 0x295   : > { %2172 = vmatpush.msk.msrb.mxu3 %vm296_vm0, %v1515_v44  ;;  %2174 = vmatpush.msk.msra.mxu0 %vm296_vm0, %v1516_v45 }
 0x296   : > { %2169 = vmatmul.msk.f32.vlgmr.msrb.gmra.mxu1 %vm293_vm1, %v1407_v21  ;;  %2173 = vmatmul.msk.f32.vlgmr.msrb.gmra.mxu3 %vm293_vm1, %v1500_v26 }
 0x297   : > { %2175 = vmatmul.msk.f32.vlgmr.msra.gmra.mxu0 %vm293_vm1, %v1500_v26  ;;  %2176 = vmatpush.msk.msra.mxu1 %vm296_vm0, %v1514_v38 }
 0x298   : > { %2182 = vmatpush.msk.msrb.mxu0 %vm296_vm0, %v1607_v40 }
 0x29a   : > { %v1605_v47 = vpop.permute.xlu1 %1604  ;;  %v1603_v48 = vpop.permute.xlu0 %1602 }
 0x29b   : > { %v1609_v49 = vsel %vm739_vm6, %v1605_v47, %v1607_v40  ;;  %v1608_v50 = vsel %vm739_vm6, %v1603_v48, %v1605_v47  ;;  %v1789_v51 = vpop.permute.xlu2 %1788 }
 0x29c   : > { %2178 = vmatpush.msk.msra.mxu2 %vm296_vm0, %v1608_v50  ;;  %2180 = vmatpush.msk.msra.mxu3 %vm296_vm0, %v1609_v49 }
 0x29d   : > { %2179 = vmatmul.msk.f32.vlgmr.msra.gmra.mxu2 %vm293_vm1, %v1593_v24 }
 0x29e   : > { %2177 = vmatmul.msk.f32.vlgmr.msra.gmra.mxu1 %vm293_vm1, %v1500_v26  ;;  %2181 = vmatmul.msk.f32.vlgmr.msra.gmra.mxu3 %vm293_vm1, %v1593_v24 }
 0x29f   : > { %2183 = vmatmul.msk.f32.vlgmr.msrb.gmra.mxu0 %vm293_vm1, %v1593_v24 }
 0x2a2   : > { %v1696_v55 = vpop.permute.xlu1 %1695 }
 0x2a3   : > { %v1701_v56 = vsel %vm833_vm7, %v1696_v55, %v1698_v46  ;;  %v1700_v57 = vpop.permute.xlu0 %1699  ;;  %v1793_v59 = vpop.permute.xlu2 %1792 }
 0x2a4   : > { %2184 = vmatpush.msk.msrb.mxu1 %vm296_vm0, %v1701_v56  ;;  %v1702_v58 = vsel %vm833_vm7, %v1698_v46, %v1700_v57  ;;  %2188 = vmatpush.msk.msrb.mxu3 %vm296_vm0, %v1700_v57 }
 0x2a5   : > { %2186 = vmatpush.msk.msrb.mxu2 %vm296_vm0, %v1702_v58 }
 0x2a6   : > { %2185 = vmatmul.msk.f32.vlgmr.msrb.gmra.mxu1 %vm293_vm1, %v1686_v31  ;;  %2189 = vmatmul.msk.f32.vlgmr.msrb.gmra.mxu3 %vm293_vm1, %v1686_v31 }
 0x2a7   : > { %2187 = vmatmul.msk.f32.vlgmr.msrb.gmra.mxu2 %vm293_vm1, %v1686_v31 }
 0x2a8   : > { %2194 = vmatpush.msk.msra.mxu2 %vm296_vm0, %v1793_v59 }
 0x2aa   : > { %v1779_v63 = vpop.permute.xlu1 %1778 }
 0x2ab   : > { %v1791_v0 = vpop.permute.xlu0 %1790  ;;  %v1872_v5 = vpop.permute.xlu2 %1871 }
 0x2ac   : > { %v1794_v2 = vsel %vm927_vm8, %v1789_v51, %v1791_v0  ;;  %v1795_v3 = vsel %vm927_vm8, %v1791_v0, %v1793_v59 }
 0x2ad   : > { %2190 = vmatpush.msk.msra.mxu0 %vm296_vm0, %v1794_v2  ;;  %2192 = vmatpush.msk.msra.mxu1 %vm296_vm0, %v1795_v3 }
 0x2ae   : > { %2191 = vmatmul.msk.f32.vlgmr.msra.gmra.mxu0 %vm293_vm1, %v1779_v63  ;;  %2193 = vmatmul.msk.f32.vlgmr.msra.gmra.mxu1 %vm293_vm1, %v1779_v63 }
 0x2af   : > { %2195 = vmatmul.msk.f32.vlgmr.msra.gmra.mxu2 %vm293_vm1, %v1779_v63 }
 0x2b2   : > { %v1884_v1 = vpop.permute.xlu1 %1883 }
 0x2b3   : > { %v1882_v4 = vpop.permute.xlu0 %1881 }
 0x2b4   : > { %v1887_v6 = vsel %vm1021_vm9, %v1882_v4, %v1884_v1 }
 0x2b5   : > { %2196 = vmatpush.msk.msra.mxu3 %vm296_vm0, %v1887_v6 }
 0x2b6   : > { %2197 = vmatmul.msk.f32.vlgmr.msra.gmra.mxu3 %vm293_vm1, %v1872_v5 }
 0x2ba   : > { %v1964_v39 = vpop.permute.xlu1 %1963 }
 0x2bb   : > { %v1886_v7 = vpop.permute.xlu0 %1885 }
 0x2bc   : > { %v1888_v8 = vsel %vm1021_vm9, %v1884_v1, %v1886_v7  ;;  %2200 = vmatpush.msk.msrb.mxu1 %vm296_vm0, %v1886_v7 }
 0x2bd   : > { %2198 = vmatpush.msk.msrb.mxu0 %vm296_vm0, %v1888_v8  ;;  %2201 = vmatmul.msk.f32.vlgmr.msrb.gmra.mxu1 %vm293_vm1, %v1872_v5 }
 0x2be   : > { %2199 = vmatmul.msk.f32.vlgmr.msrb.gmra.mxu0 %vm293_vm1, %v1872_v5  ;;  %vm2000_vm1 = vcmask 551936  }
 0x2c3   : > { %v1982_v60 = vpop.permute.xlu0 %1981 }
 0x2d9   : > { %v1980_v53 = vpop.permute.xlu2 %1979 }
 0x2da   : > { %v1984_v1 = vsel %vm645_vm5, %v1980_v53, %v1982_v60 }
 0x2e1   : > { %v1232_v10 = vpop.f32.mrf.mxu1 }
 0x2f1   : > { %v1978_v56 = vpop.permute.xlu1 %1977 }
 0x2f2   : > { %v1212_v11 = vpop.f32.mrf.mxu0  ;;  %v1983_v2 = vsel %vm645_vm5, %v1978_v56, %v1980_v53 }
 0x2f8   : > { %v1192_v9 = vpop.f32.mrf.mxu3 }
 0x2f9   : > { %v1267_v28 = vadd.f32 %v1266_v12, %v1192_v9 }
 0x2fa   : > { %v1306_v15 = vpop.f32.mrf.mxu0 }
 0x2fb   : > { %v1307_v27 = vadd.f32 %v1306_v15, %v1232_v10 }
 0x300   : > { %v1286_v13 = vpop.f32.mrf.mxu3 }
 0x301   : > { %v1287_v29 = vadd.f32 %v1286_v13, %v1212_v11 }
 0x302   : > { %v1356_v14 = vpop.f32.mrf.mxu1 }
 0x303   : > { %v1399_v32 = vadd.f32 %v1356_v14, %v1267_v28 }
 0x308   : > { %v1376_v16 = vpop.f32.mrf.mxu2 }
 0x309   : > { %v1396_v18 = vpop.f32.mrf.mxu3  ;;  %v1400_v33 = vadd.f32 %v1376_v16, %v1287_v29 }
 0x30a   : > { %v1449_v19 = vpop.f32.mrf.mxu0  ;;  %v1401_v30 = vadd.f32 %v1396_v18, %v1307_v27 }
 0x30b   : > { %v1492_v37 = vadd.f32 %v1449_v19, %v1399_v32 }
 0x313   : > { %v1469_v17 = vpop.f32.mrf.mxu1 }
 0x314   : > { %v1562_v23 = vpop.f32.mrf.mxu0  ;;  %v1493_v38 = vadd.f32 %v1469_v17, %v1400_v33 }
 0x316   : > { %v1586_v42 = vadd.f32 %v1562_v23, %v1493_v38 }
 0x317   : > { %v1489_v20 = vpop.f32.mrf.mxu2 }
 0x318   : > { %v1494_v35 = vadd.f32 %v1489_v20, %v1401_v30 }
 0x319   : > { %v1542_v21 = vpop.f32.mrf.mxu3 }
 0x31a   : > { %v1585_v36 = vadd.f32 %v1542_v21, %v1492_v37 }
 0x31b   : > { %v1582_v22 = vpop.f32.mrf.mxu1 }
 0x31c   : > { %v1675_v31 = vpop.f32.mrf.mxu0  ;;  %v1587_v40 = vadd.f32 %v1582_v22, %v1494_v35 }
 0x31e   : > { %v1680_v47 = vadd.f32 %v1675_v31, %v1587_v40 }
 0x320   : > { %v1635_v24 = vpop.f32.mrf.mxu2 }
 0x321   : > { %v1655_v25 = vpop.f32.mrf.mxu3  ;;  %v1678_v43 = vadd.f32 %v1635_v24, %v1585_v36 }
 0x322   : > { %v1679_v46 = vadd.f32 %v1655_v25, %v1586_v42 }
 0x323   : > { %v1728_v26 = vpop.f32.mrf.mxu1 }
 0x324   : > { %v1771_v48 = vadd.f32 %v1728_v26, %v1678_v43 }
 0x329   : > { %v1768_v41 = vpop.f32.mrf.mxu3 }
 0x32a   : > { %v1748_v34 = vpop.f32.mrf.mxu2  ;;  %v1773_v51 = vadd.f32 %v1768_v41, %v1680_v47 }
 0x32b   : > { %v1841_v44 = vpop.f32.mrf.mxu1  ;;  %v1821_v45 = vpop.f32.mrf.mxu0  ;;  %v1772_v49 = vadd.f32 %v1748_v34, %v1679_v46 }
 0x32c   : > { %v1864_v52 = vadd.f32 %v1821_v45, %v1771_v48 }
 0x32d   : > { %v1865_v57 = vadd.f32 %v1841_v44, %v1772_v49 }
 0x332   : > { %v1861_v50 = vpop.f32.mrf.mxu2 }
 0x333   : > { %v1866_v54 = vadd.f32 %v1861_v50, %v1773_v51 }
 0x339   : > { %v1914_v55 = vpop.f32.mrf.mxu3 }
 0x33a   : > { %v1957_v58 = vadd.f32 %v1914_v55, %v1864_v52  ;;  %v1954_v59 = vpop.f32.mrf.mxu1 }
 0x33b   : > { %v1959_v61 = vadd.f32 %v1954_v59, %v1866_v54  ;;  %v1934_v62 = vpop.f32.mrf.mxu0 }
 0x33c   : > { %v1966_v63 = vadd.f32 %v1964_v39, %v1957_v58  ;;  %v1958_v0 = vadd.f32 %v1934_v62, %v1865_v57 }
 0x33d   : > { %v1968_v3 = vadd.f32 %v1964_v39, %v1959_v61 }
 0x33e   : > { %v1967_v4 = vadd.f32 %v1964_v39, %v1958_v0  ;;  %v1988_v6 = vadd.f32 %v1983_v2, %v1966_v63 }
 0x33f   : > { %v1990_v5 = vadd.f32 %v1982_v60, %v1968_v3 }
 0x340   : > { %v1989_v7 = vadd.f32 %v1984_v1, %v1967_v4  ;;  %v1991_v10 = vmax.f32 %v1988_v6, 0.0 }
 0x341   : > { %v1993_v8 = vmax.f32 %v1990_v5, 0.0 }
 0x342   : > { %v1992_v9 = vmax.f32 %v1989_v7, 0.0 }
 0x343   : > { %2001 = vst.msk [vmem:[%s269_s14 + $0x8] sm:$0xf] %vm2000_vm1, %v1993_v8 }
 0x344   : > { %v1996_v11 = vrot.slane %v1992_v9, 4 }
 0x346   : > { %v1997_v12 = vsel %vm296_vm0, %v1991_v10, %v1996_v11 }
 0x347   : > { %1999 = vst [vmem:[%s269_s14] sm:$0xff] %v1997_v12 }
 0x348   : > { %2333 = shalt.err (!%p2330_p7)
}
 0x349   : > { %2211 = dma.vmem_to_hbm [thread:$0]  (%p2473_p11), %s2017_s19, 192, %s2019_s11, %s2003_s7  }
 0x34a PF: > { %s2030_s10 = sand.u32 1, %s2360_s21   ;;  %p2218_p8 = pnand %p2091_p9, %p2477_p12 }
 0x34b   : > { %s2031_s15 = scalar_lea.sflag [#allocation5], %s2030_s10 }
 0x34c   : > { %p2219_p10 = pneg %p2218_p8 }
 0x34e   : > { %2355 = dma.done.wait (%p2219_p10), %s2031_s15, 192  }
 0x34f   : > { %2357 = vsyncadd (%p2219_p10), %s2031_s15, 4294967104  ;;  %s2927_s16 = sld [smem:[#allocation9_spill]]  ;;  %p19_p0 = scmp.ge.s32.totalorder %s2452_s27, 4  }
 0x350   : > { %s2928_s21 = smov %s2364_s22  ;;  %s2929_s22 = smov %s2368_s23 }
 0x351   : > { %s2931_s24 = smov %s2452_s27  ;;  %21 = sbr.rel (!%p19_p0) target bundleno = 5 (0x5), region = 108 }
 0x355   : > { %s2930_s23 = smov %s2927_s16 }
 0x356   :  { %2037 = vsyncpa [#allocation4], 1 }
 0x357   :  { %2039 = vsyncpa [#allocation4 + $0x1], 1 }
 0x358   :  { %2040 = vsyncpa [#allocation5], 1 }
 0x359   :  { %2042 = vsyncpa [#allocation5 + $0x1], 1 }

</bundles_post_ra>
